<compile_context>
chip_gen: v5e
topology: v5e:2x2
jax: 0.10.0
libtpu: 0.0.40
codegen_flags: <defaults>
</compile_context>

<pallas_src>
import jax
import jax.numpy as jnp
from jax.experimental import pallas as pl
from jax.experimental.pallas import tpu as pltpu


def _make_kernel(bh, wl, scatter_dtype):
    def kernel(x_ref, w_ref, b_ref, d_ref, o_ref):
        # x_ref: (1, c_in, bh*wl)   bh row-groups, each wl = R*W input lanes
        # w_ref: (4, c_out, c_in)   taps ordered t = 2*dh + dw
        # b_ref: (c_out, 1)         f32 bias
        # d_ref: (4, wl, 4*wl)      0/1 lane-scatter matrices per tap
        # o_ref: (1, c_out, bh*4*wl)
        w00, w01, w10, w11 = w_ref[0], w_ref[1], w_ref[2], w_ref[3]
        d00, d01, d10, d11 = d_ref[0], d_ref[1], d_ref[2], d_ref[3]
        bias = b_ref[...]                       # (c_out, 1); broadcasts over lanes

        for g in range(bh):                     # small static loop (bh <= 8)
            xg = x_ref[0, :, g * wl:(g + 1) * wl]               # (c_in, wl)
            # Tap matmuls (1x1 convs), f32 accumulation on the MXU.
            r00 = jnp.dot(w00, xg, preferred_element_type=jnp.float32)
            r01 = jnp.dot(w01, xg, preferred_element_type=jnp.float32)
            r10 = jnp.dot(w10, xg, preferred_element_type=jnp.float32)
            r11 = jnp.dot(w11, xg, preferred_element_type=jnp.float32)
            # Pixel shuffle on the MXU: single accumulation chain of four 0/1
            # scatter matmuls -> one lane-dense (c_out, 4*wl) tile.
            y = jnp.dot(r00.astype(scatter_dtype), d00,
                        preferred_element_type=jnp.float32)
            y = y + jnp.dot(r01.astype(scatter_dtype), d01,
                            preferred_element_type=jnp.float32)
            y = y + jnp.dot(r10.astype(scatter_dtype), d10,
                            preferred_element_type=jnp.float32)
            y = y + jnp.dot(r11.astype(scatter_dtype), d11,
                            preferred_element_type=jnp.float32)
            y = y + bias
            # Full-sublane, 128-aligned (unmasked) store.
            o_ref[0, :, g * 4 * wl:(g + 1) * 4 * wl] = y.astype(o_ref.dtype)

    return kernel


def _pick_fold(h, w):
    """Rows folded into lanes per group: smallest R | H with (R*W) % 128 == 0."""
    for r in range(1, h + 1):
        if h % r == 0 and (r * w) % 128 == 0 and r * w <= 1024:
            return r
    # Fallback: fold the whole image into one lane group (fine for small maps).
    # TODO(synk): chunk very wide / awkward-width images instead of whole-image fold.
    return h


def _pick_groups(h_groups, per_group_bytes, budget_bytes, n, max_groups=8):
    """Row-groups per grid step: largest divisor of h_groups <= 8 within budget."""
    divs = [d for d in range(1, min(h_groups, max_groups) + 1) if h_groups % d == 0]
    ok = [d for d in divs if d * per_group_bytes <= budget_bytes] or [1]
    best = max(ok)
    if n == 1:  # keep >= 2 grid steps so both megacore TCs get work when possible
        two_plus = [d for d in ok if h_groups // d >= 2]
        if two_plus:
            best = max(two_plus)
    return best


def upsample(x, weight, bias):
    """ConvTranspose2d(C_in, C_out, kernel_size=2, stride=2) on an NCHW tensor."""
    n, c_in, h, w = x.shape
    assert weight.shape[0] == c_in and weight.shape[2:] == (2, 2), weight.shape
    c_out = weight.shape[1]

    compute_dtype = x.dtype
    out_dtype = x.dtype
    # bf16 scatter operands only when the output is bf16 (keeps f32 path exact).
    scatter_dtype = jnp.bfloat16 if out_dtype == jnp.bfloat16 else jnp.float32

    # Fold R rows into the lane dim: wl = R*W lanes per row-group.
    r_fold = _pick_fold(h, w)
    wl = r_fold * w
    h_groups = h // r_fold

    # --- tiny wrapper-side prep (free reshapes / small constants only) ---
    x_flat = x.reshape(n, c_in, h * w)
    w_taps = jnp.transpose(weight, (2, 3, 1, 0)).reshape(4, c_out, c_in)
    w_taps = w_taps.astype(compute_dtype)
    b2d = bias.astype(jnp.float32).reshape(c_out, 1)

    # 0/1 scatter matrices: input lane (r_in*w + j) of a row-group -> output lane
    # (r_in*4w + dh*2w + 2j + dw), i.e. exactly the flat layout of the upsampled rows.
    rows = jnp.arange(wl)
    r_in, j = rows // w, rows % w
    cols = jnp.arange(4 * wl)[None, :]

    def _scatter(dh, dw):
        tgt = (r_in * 4 * w + dh * 2 * w + 2 * j + dw)[:, None]
        return (cols == tgt).astype(scatter_dtype)

    d_mats = jnp.stack(
        [_scatter(0, 0), _scatter(0, 1), _scatter(1, 0), _scatter(1, 1)])

    # Generation-aware VMEM budgeting (v7x has 64 MiB, v5e/v6e 128 MiB).
    try:
        vmem_cap = int(pltpu.get_tpu_info().vmem_capacity_bytes)
    except Exception:
        vmem_cap = 64 * 1024 * 1024                 # conservative default
    vmem_limit = min(int(vmem_cap * 5 // 8), 100 * 1024 * 1024)

    itemsize = jnp.dtype(compute_dtype).itemsize
    resident = (d_mats.size * jnp.dtype(scatter_dtype).itemsize
                + w_taps.size * itemsize + b2d.size * 4)
    per_group = (2 * (c_in + 4 * c_out) * wl * itemsize   # double-buffered in/out blocks
                 + 8 * c_out * wl * 4)                    # f32 matmul intermediates
    budget = max(vmem_cap // 4 - resident, per_group)
    bh = _pick_groups(h_groups, per_group, budget, n)

    grid = (n, h_groups // bh)
    kernel = _make_kernel(bh, wl, scatter_dtype)

    out_flat = pl.pallas_call(
        kernel,
        out_shape=jax.ShapeDtypeStruct((n, c_out, 4 * h * w), out_dtype),
        grid=grid,
        in_specs=[
            pl.BlockSpec((1, c_in, bh * wl), lambda ni, gi: (ni, 0, gi)),
            pl.BlockSpec((4, c_out, c_in), lambda ni, gi: (0, 0, 0)),
            pl.BlockSpec((c_out, 1), lambda ni, gi: (0, 0)),
            pl.BlockSpec((4, wl, 4 * wl), lambda ni, gi: (0, 0, 0)),
        ],
        out_specs=pl.BlockSpec((1, c_out, bh * 4 * wl), lambda ni, gi: (ni, 0, gi)),
        compiler_params=pltpu.CompilerParams(
            dimension_semantics=("parallel", "parallel"),
            vmem_limit_bytes=vmem_limit,
        ),
    )(x_flat, w_taps, b2d, d_mats)

    # Free contiguous reshape: flat lane offset == (2i+dh)*2w + (2j+dw).
    return out_flat.reshape(n, c_out, 2 * h, 2 * w)


if __name__ == "__main__":
    key = jax.random.PRNGKey(0)
    kx, kw, kb = jax.random.split(key, 3)
    n, c_in, c_out, h, w = 2, 4, 8, 16, 16
    x = jax.random.normal(kx, (n, c_in, h, w), dtype=jnp.float32)
    weight = 0.1 * jax.random.normal(kw, (c_in, c_out, 2, 2), dtype=jnp.float32)
    bias = 0.1 * jax.random.normal(kb, (c_out,), dtype=jnp.float32)

    y = upsample(x, weight, bias)
    jax.block_until_ready(y)

    # Pure-JAX reference: ConvTranspose2d(k=2, s=2) == per-tap 1x1 conv + pixel shuffle.
    ref = jnp.einsum("ncij,copq->noipjq", x, weight).reshape(n, c_out, 2 * h, 2 * w)
    ref = ref + bias[None, :, None, None]
    assert y.shape == (n, c_out, 2 * h, 2 * w), y.shape
    max_err = float(jnp.max(jnp.abs(y - ref)))
    assert jnp.allclose(y, ref, rtol=1e-3, atol=1e-3), max_err

    print("KERNEL_OK")
</pallas_src>

<mosaic_0001>
module attributes {stable_mosaic.version = 11 : i64} {
  func.func @kernel(%arg0: i32, %arg1: i32, %arg2: memref<1x4x256xf32, #tpu.memory_space<vmem>>, %arg3: memref<4x8x4xf32, #tpu.memory_space<vmem>>, %arg4: memref<8x1xf32, #tpu.memory_space<vmem>>, %arg5: memref<4x128x512xf32, #tpu.memory_space<vmem>>, %arg6: memref<1x8x1024xf32, #tpu.memory_space<vmem>>) attributes {dimension_semantics = [#tpu.dimension_semantics<parallel>, #tpu.dimension_semantics<parallel>], iteration_bounds = array<i64: 2, 1>, scalar_prefetch = 0 : i64, scratch_operands = 0 : i64, tpu.core_type = #tpu.core_type<tc>, window_params = [{transform_indices = @transform_0, window_bounds = array<i64: 1, 4, 256>}, {pipeline_mode = #tpu.pipeline_mode<synchronous>, transform_indices = @transform_1, window_bounds = array<i64: 4, 8, 4>}, {pipeline_mode = #tpu.pipeline_mode<synchronous>, transform_indices = @transform_2, window_bounds = array<i64: 8, 1>}, {pipeline_mode = #tpu.pipeline_mode<synchronous>, transform_indices = @transform_3, window_bounds = array<i64: 4, 128, 512>}, {transform_indices = @transform_4, window_bounds = array<i64: 1, 8, 1024>}]} {
    %c0 = arith.constant 0 : index
    %c0_0 = arith.constant 0 : index
    %c0_1 = arith.constant 0 : index
    %0 = vector.load %arg3[%c0, %c0_0, %c0_1] : memref<4x8x4xf32, #tpu.memory_space<vmem>>, vector<1x8x4xf32>
    %1 = vector.shape_cast %0 : vector<1x8x4xf32> to vector<8x4xf32>
    %c1 = arith.constant 1 : index
    %c0_2 = arith.constant 0 : index
    %c0_3 = arith.constant 0 : index
    %2 = vector.load %arg3[%c1, %c0_2, %c0_3] : memref<4x8x4xf32, #tpu.memory_space<vmem>>, vector<1x8x4xf32>
    %3 = vector.shape_cast %2 : vector<1x8x4xf32> to vector<8x4xf32>
    %c2 = arith.constant 2 : index
    %c0_4 = arith.constant 0 : index
    %c0_5 = arith.constant 0 : index
    %4 = vector.load %arg3[%c2, %c0_4, %c0_5] : memref<4x8x4xf32, #tpu.memory_space<vmem>>, vector<1x8x4xf32>
    %5 = vector.shape_cast %4 : vector<1x8x4xf32> to vector<8x4xf32>
    %c3 = arith.constant 3 : index
    %c0_6 = arith.constant 0 : index
    %c0_7 = arith.constant 0 : index
    %6 = vector.load %arg3[%c3, %c0_6, %c0_7] : memref<4x8x4xf32, #tpu.memory_space<vmem>>, vector<1x8x4xf32>
    %7 = vector.shape_cast %6 : vector<1x8x4xf32> to vector<8x4xf32>
    %c0_8 = arith.constant 0 : index
    %c0_9 = arith.constant 0 : index
    %c0_10 = arith.constant 0 : index
    %8 = vector.load %arg5[%c0_8, %c0_9, %c0_10] : memref<4x128x512xf32, #tpu.memory_space<vmem>>, vector<1x128x512xf32>
    %9 = vector.shape_cast %8 : vector<1x128x512xf32> to vector<128x512xf32>
    %c1_11 = arith.constant 1 : index
    %c0_12 = arith.constant 0 : index
    %c0_13 = arith.constant 0 : index
    %10 = vector.load %arg5[%c1_11, %c0_12, %c0_13] : memref<4x128x512xf32, #tpu.memory_space<vmem>>, vector<1x128x512xf32>
    %11 = vector.shape_cast %10 : vector<1x128x512xf32> to vector<128x512xf32>
    %c2_14 = arith.constant 2 : index
    %c0_15 = arith.constant 0 : index
    %c0_16 = arith.constant 0 : index
    %12 = vector.load %arg5[%c2_14, %c0_15, %c0_16] : memref<4x128x512xf32, #tpu.memory_space<vmem>>, vector<1x128x512xf32>
    %13 = vector.shape_cast %12 : vector<1x128x512xf32> to vector<128x512xf32>
    %c3_17 = arith.constant 3 : index
    %c0_18 = arith.constant 0 : index
    %c0_19 = arith.constant 0 : index
    %14 = vector.load %arg5[%c3_17, %c0_18, %c0_19] : memref<4x128x512xf32, #tpu.memory_space<vmem>>, vector<1x128x512xf32>
    %15 = vector.shape_cast %14 : vector<1x128x512xf32> to vector<128x512xf32>
    %c0_20 = arith.constant 0 : index
    %c0_21 = arith.constant 0 : index
    %16 = vector.load %arg4[%c0_20, %c0_21] : memref<8x1xf32, #tpu.memory_space<vmem>>, vector<8x1xf32>
    %c0_22 = arith.constant 0 : index
    %c0_23 = arith.constant 0 : index
    %c0_24 = arith.constant 0 : index
    %17 = vector.load %arg2[%c0_22, %c0_23, %c0_24] : memref<1x4x256xf32, #tpu.memory_space<vmem>>, vector<1x4x128xf32>
    %18 = vector.shape_cast %17 : vector<1x4x128xf32> to vector<4x128xf32>
    %cst = arith.constant dense<0.000000e+00> : vector<8x128xf32>
    %19 = tpu.matmul %1, %18, %cst {dimension_numbers = #tpu.dot_dimension_numbers<[1], [0], [0], [1], [0, 0, 1, 1], [], []>} : vector<8x4xf32>, vector<4x128xf32>, vector<8x128xf32> -> vector<8x128xf32>
    %cst_25 = arith.constant dense<0.000000e+00> : vector<8x128xf32>
    %20 = tpu.matmul %3, %18, %cst_25 {dimension_numbers = #tpu.dot_dimension_numbers<[1], [0], [0], [1], [0, 0, 1, 1], [], []>} : vector<8x4xf32>, vector<4x128xf32>, vector<8x128xf32> -> vector<8x128xf32>
    %cst_26 = arith.constant dense<0.000000e+00> : vector<8x128xf32>
    %21 = tpu.matmul %5, %18, %cst_26 {dimension_numbers = #tpu.dot_dimension_numbers<[1], [0], [0], [1], [0, 0, 1, 1], [], []>} : vector<8x4xf32>, vector<4x128xf32>, vector<8x128xf32> -> vector<8x128xf32>
    %cst_27 = arith.constant dense<0.000000e+00> : vector<8x128xf32>
    %22 = tpu.matmul %7, %18, %cst_27 {dimension_numbers = #tpu.dot_dimension_numbers<[1], [0], [0], [1], [0, 0, 1, 1], [], []>} : vector<8x4xf32>, vector<4x128xf32>, vector<8x128xf32> -> vector<8x128xf32>
    %cst_28 = arith.constant dense<0.000000e+00> : vector<8x512xf32>
    %23 = tpu.matmul %19, %9, %cst_28 {dimension_numbers = #tpu.dot_dimension_numbers<[1], [0], [0], [1], [0, 0, 1, 1], [], []>} : vector<8x128xf32>, vector<128x512xf32>, vector<8x512xf32> -> vector<8x512xf32>
    %cst_29 = arith.constant dense<0.000000e+00> : vector<8x512xf32>
    %24 = tpu.matmul %20, %11, %cst_29 {dimension_numbers = #tpu.dot_dimension_numbers<[1], [0], [0], [1], [0, 0, 1, 1], [], []>} : vector<8x128xf32>, vector<128x512xf32>, vector<8x512xf32> -> vector<8x512xf32>
    %25 = arith.addf %23, %24 : vector<8x512xf32>
    %cst_30 = arith.constant dense<0.000000e+00> : vector<8x512xf32>
    %26 = tpu.matmul %21, %13, %cst_30 {dimension_numbers = #tpu.dot_dimension_numbers<[1], [0], [0], [1], [0, 0, 1, 1], [], []>} : vector<8x128xf32>, vector<128x512xf32>, vector<8x512xf32> -> vector<8x512xf32>
    %27 = arith.addf %25, %26 : vector<8x512xf32>
    %cst_31 = arith.constant dense<0.000000e+00> : vector<8x512xf32>
    %28 = tpu.matmul %22, %15, %cst_31 {dimension_numbers = #tpu.dot_dimension_numbers<[1], [0], [0], [1], [0, 0, 1, 1], [], []>} : vector<8x128xf32>, vector<128x512xf32>, vector<8x512xf32> -> vector<8x512xf32>
    %29 = arith.addf %27, %28 : vector<8x512xf32>
    %30 = vector.broadcast %16 : vector<8x1xf32> to vector<8x512xf32>
    %31 = arith.addf %29, %30 : vector<8x512xf32>
    %c0_32 = arith.constant 0 : index
    %c0_33 = arith.constant 0 : index
    %c0_34 = arith.constant 0 : index
    %32 = vector.load %arg6[%c0_32, %c0_33, %c0_34] : memref<1x8x1024xf32, #tpu.memory_space<vmem>>, vector<1x8x512xf32>
    %33 = vector.shape_cast %32 : vector<1x8x512xf32> to vector<8x512xf32>
    %34 = vector.shape_cast %31 : vector<8x512xf32> to vector<1x8x512xf32>
    tpu.vector_store %arg6[%c0_32, %c0_33, %c0_34], %34 {strides = array<i32>} : memref<1x8x1024xf32, #tpu.memory_space<vmem>>, vector<1x8x512xf32>,
    %c0_35 = arith.constant 0 : index
    %c0_36 = arith.constant 0 : index
    %c128 = arith.constant 128 : index
    %35 = vector.load %arg2[%c0_35, %c0_36, %c128] : memref<1x4x256xf32, #tpu.memory_space<vmem>>, vector<1x4x128xf32>
    %36 = vector.shape_cast %35 : vector<1x4x128xf32> to vector<4x128xf32>
    %cst_37 = arith.constant dense<0.000000e+00> : vector<8x128xf32>
    %37 = tpu.matmul %1, %36, %cst_37 {dimension_numbers = #tpu.dot_dimension_numbers<[1], [0], [0], [1], [0, 0, 1, 1], [], []>} : vector<8x4xf32>, vector<4x128xf32>, vector<8x128xf32> -> vector<8x128xf32>
    %cst_38 = arith.constant dense<0.000000e+00> : vector<8x128xf32>
    %38 = tpu.matmul %3, %36, %cst_38 {dimension_numbers = #tpu.dot_dimension_numbers<[1], [0], [0], [1], [0, 0, 1, 1], [], []>} : vector<8x4xf32>, vector<4x128xf32>, vector<8x128xf32> -> vector<8x128xf32>
    %cst_39 = arith.constant dense<0.000000e+00> : vector<8x128xf32>
    %39 = tpu.matmul %5, %36, %cst_39 {dimension_numbers = #tpu.dot_dimension_numbers<[1], [0], [0], [1], [0, 0, 1, 1], [], []>} : vector<8x4xf32>, vector<4x128xf32>, vector<8x128xf32> -> vector<8x128xf32>
    %cst_40 = arith.constant dense<0.000000e+00> : vector<8x128xf32>
    %40 = tpu.matmul %7, %36, %cst_40 {dimension_numbers = #tpu.dot_dimension_numbers<[1], [0], [0], [1], [0, 0, 1, 1], [], []>} : vector<8x4xf32>, vector<4x128xf32>, vector<8x128xf32> -> vector<8x128xf32>
    %cst_41 = arith.constant dense<0.000000e+00> : vector<8x512xf32>
    %41 = tpu.matmul %37, %9, %cst_41 {dimension_numbers = #tpu.dot_dimension_numbers<[1], [0], [0], [1], [0, 0, 1, 1], [], []>} : vector<8x128xf32>, vector<128x512xf32>, vector<8x512xf32> -> vector<8x512xf32>
    %cst_42 = arith.constant dense<0.000000e+00> : vector<8x512xf32>
    %42 = tpu.matmul %38, %11, %cst_42 {dimension_numbers = #tpu.dot_dimension_numbers<[1], [0], [0], [1], [0, 0, 1, 1], [], []>} : vector<8x128xf32>, vector<128x512xf32>, vector<8x512xf32> -> vector<8x512xf32>
    %43 = arith.addf %41, %42 : vector<8x512xf32>
    %cst_43 = arith.constant dense<0.000000e+00> : vector<8x512xf32>
    %44 = tpu.matmul %39, %13, %cst_43 {dimension_numbers = #tpu.dot_dimension_numbers<[1], [0], [0], [1], [0, 0, 1, 1], [], []>} : vector<8x128xf32>, vector<128x512xf32>, vector<8x512xf32> -> vector<8x512xf32>
    %45 = arith.addf %43, %44 : vector<8x512xf32>
    %cst_44 = arith.constant dense<0.000000e+00> : vector<8x512xf32>
    %46 = tpu.matmul %40, %15, %cst_44 {dimension_numbers = #tpu.dot_dimension_numbers<[1], [0], [0], [1], [0, 0, 1, 1], [], []>} : vector<8x128xf32>, vector<128x512xf32>, vector<8x512xf32> -> vector<8x512xf32>
    %47 = arith.addf %45, %46 : vector<8x512xf32>
    %48 = vector.broadcast %16 : vector<8x1xf32> to vector<8x512xf32>
    %49 = arith.addf %47, %48 : vector<8x512xf32>
    %c0_45 = arith.constant 0 : index
    %c0_46 = arith.constant 0 : index
    %c512 = arith.constant 512 : index
    %50 = vector.load %arg6[%c0_45, %c0_46, %c512] : memref<1x8x1024xf32, #tpu.memory_space<vmem>>, vector<1x8x512xf32>
    %51 = vector.shape_cast %50 : vector<1x8x512xf32> to vector<8x512xf32>
    %52 = vector.shape_cast %49 : vector<8x512xf32> to vector<1x8x512xf32>
    tpu.vector_store %arg6[%c0_45, %c0_46, %c512], %52 {strides = array<i32>} : memref<1x8x1024xf32, #tpu.memory_space<vmem>>, vector<1x8x512xf32>,
    return
  }
  func.func @transform_0(%arg0: i32, %arg1: i32) -> (i32, i32, i32) {
    %c0_i32 = arith.constant 0 : i32
    %c0_i32_0 = arith.constant 0 : i32
    return %arg0, %c0_i32, %arg1 : i32, i32, i32
  }
  func.func @transform_1(%arg0: i32, %arg1: i32) -> (i32, i32, i32) {
    %c0_i32 = arith.constant 0 : i32
    %c0_i32_0 = arith.constant 0 : i32
    %c0_i32_1 = arith.constant 0 : i32
    %c0_i32_2 = arith.constant 0 : i32
    return %c0_i32, %c0_i32_0, %c0_i32_1 : i32, i32, i32
  }
  func.func @transform_2(%arg0: i32, %arg1: i32) -> (i32, i32) {
    %c0_i32 = arith.constant 0 : i32
    %c0_i32_0 = arith.constant 0 : i32
    %c0_i32_1 = arith.constant 0 : i32
    return %c0_i32, %c0_i32_0 : i32, i32
  }
  func.func @transform_3(%arg0: i32, %arg1: i32) -> (i32, i32, i32) {
    %c0_i32 = arith.constant 0 : i32
    %c0_i32_0 = arith.constant 0 : i32
    %c0_i32_1 = arith.constant 0 : i32
    %c0_i32_2 = arith.constant 0 : i32
    return %c0_i32, %c0_i32_0, %c0_i32_1 : i32, i32, i32
  }
  func.func @transform_4(%arg0: i32, %arg1: i32) -> (i32, i32, i32) {
    %c0_i32 = arith.constant 0 : i32
    %c0_i32_0 = arith.constant 0 : i32
    return %arg0, %c0_i32, %arg1 : i32, i32, i32
  }
}

</mosaic_0001>

<bundles_post_ra>
// kernel: tpu_custom_call.1
= control target key start
LH: loop header
LB: loop body
LE: loop exit
PB: predicated region body
PF: predicated region fallthrough
CT: control target
= control target key end

     0   :  { %9 = vsyncpa [#allocation3], 0  ;;  %s2812_s0 = inlined_call_operand.vmem [shape: f32[2,4,256], index: 0, kind: input, shape index: {}]   ;;  %s2813_s1 = inlined_call_operand.vmem [shape: f32[4,8,4], index: 1, kind: input, shape index: {}]   ;;  %s2814_s2 = inlined_call_operand.vmem [shape: f32[8,1], index: 2, kind: input, shape index: {}]   ;;  %s2815_s3 = inlined_call_operand.hbm [shape: f32[4,128,512], index: 3, kind: input, shape index: {}]   ;;  %s2816_s4 = inlined_call_operand.hbm [shape: f32[2,8,1024], index: 4, kind: output, shape index: {}]  }
   0x1   :  { %10 = vsyncpa [#allocation4], 0 }
   0x2   :  { %12 = vsyncpa [#allocation4 + $0x1], 0  ;;  %s1768_s15 = smov 0   ;;  %s1770_s16 = smov 0  }
   0x3   :  { %s1772_s17 = smov 0   ;;  %s1774_s18 = smov 0  }
   0x4   :  { %s1776_s19 = smov 0   ;;  %s1778_s20 = smov 0  }
   0x5 LB: > { %s1477_s21 = sadd.s32 4294967295, %s1737_s20   ;;  %s1478_s22 = sadd.s32 4294967294, %s1737_s20   ;;  %s1737_s20 = sphi %s1778_s20, %s18_s20   ;;  %s1733_s19 = sphi %s1776_s19, %s3318_s19   ;;  %s1729_s18 = sphi %s1774_s18, %s3317_s18   ;;  %s1725_s17 = sphi %s1772_s17, %s3316_s17   ;;  %s1721_s16 = sphi %s1770_s16, %s3315_s16   ;;  %s1717_s15 = sphi %s1768_s15, %s3314_s15  }
   0x6   : > { %s30_s23 = sadd.s32 1, %s1733_s19  ;;  %s130_s24 = sadd.s32 1, %s1725_s17 }
   0x7   : > { %p32_p0 = scmp.ge.s32.totalorder %s30_s23, 2  ;;  %p140_p1 = scmp.ne.s32.totalorder %s1725_s17, %s1721_s16 }
   0x8   : > { %p141_p2 = scmp.eq.s32.totalorder %s1477_s21, 1  ;;  %p146_p3 = scmp.ne.s32.totalorder %s1721_s16, %s1717_s15 }
   0x9   : > { %s3320_s23 = smov (%p32_p0, %s30_s23), 0  ;;  %p147_p5 = scmp.eq.s32.totalorder %s1478_s22, 1 }
   0xa   : > { %p1808_p4 = por %p141_p2, %p140_p1  ;;  %s125_s26 = ssub.s32 %s1733_s19, %s3320_s23 }
   0xb   : > { %p1479_p6 = scmp.ge.s32.totalorder %s1737_s20, 1  ;;  %p128_p7 = scmp.eq.s32.totalorder %s125_s26, 0 }
   0xc   : > { %p1815_p8 = por %p147_p5, %p146_p3  ;;  %p154_p9 = scmp.lt.s32.totalorder %s1737_s20, 3 }
   0xd   : > { %s1821_s28 = scalar_select %p128_p7, %s1725_s17, %s130_s24  }
   0xe   : > { %p155_p10 = pnand %p1479_p6, %p154_p9  ;;  %p1527_p11 = scmp.eq.s32.totalorder %s1477_s21, 0 }
   0xf   : > { %s171_s5 = sshll.u32 %s2815_s3, 4  ;;  %s1739_s6 = smov [#allocation2]   ;;  %s172_s5 = int_to_ptr.hbm [resolvable:$true] %s171_s5 }
  0x10   : > { %p1519_p12 = pneg %p155_p10  ;;  %s173_s7 = sshll.u32 %s1739_s6, 4  ;;  %s174_s7 = int_to_ptr.vmem [resolvable:$true] %s173_s7 }
  0x11   : > { %s1740_s8 = smov 512   ;;  %s1741_s9 = smov 32  }
  0x12   : > { %p1520_p13 = pnand %p1527_p11, %p1519_p12  ;;  %202 = sbr.rel (%p155_p10) target bundleno = 613 (0x265), region = 36 }
  0x14   : > { %1522 = dma.hbm_to_vmem [thread:$0]  (!%p1520_p13), %s172_s5, 32768, %s174_s7, [#allocation3], %s1740_s8, %s1740_s8, %s1741_s9  }
  0x17   : > { %1708 = dma.done.wait (%p1527_p11), [#allocation3], 32768  }
  0x18   : > { %1710 = vsyncadd (%p1527_p11), [#allocation3], 4294934528  ;;  %p234_p0 = scmp.lt.s32.totalorder %s1729_s18, 1  ;;  %vm516_vm0 = vcmask 1043456   ;;  %vm512_vm1 = vcmask 31744   ;;  %v1487_v1 = vld [vmem:[%s2813_s1 + $0x8] sm:$0xff] }
  0x19   : > { %v244_v2 = vld [vmem:[%s2813_s1] sm:$0xff]  ;;  %v1488_v3 = vld [vmem:[%s2813_s1 + $0x10] sm:$0xff]  ;;  %v1489_v4 = vld [vmem:[%s2813_s1 + $0x18] sm:$0xff]  ;;  %s230_s24 = sand.u32 1, %s1721_s16   ;;  %s1512_s30 = sshll.u32 %s1729_s18, 6 }
  0x1a   : > { %s235_s10 = scalar_select %p234_p0, %s1729_s18, 1  ;;  %v376_v5 = vld [vmem:[#allocation2 + $0x3e0] sm:$0xff]  ;;  %v377_v6 = vld [vmem:[#allocation2 + $0x3e8] sm:$0xff]  ;;  %v378_v7 = vld [vmem:[#allocation2 + $0x3f0] sm:$0xff] }
  0x1b   : > { %v379_v8 = vld [vmem:[#allocation2 + $0x3f8] sm:$0xff]  ;;  %v372_v9 = vld [vmem:[#allocation2 + $0x3c0] sm:$0xff]  ;;  %v373_v10 = vld [vmem:[#allocation2 + $0x3c8] sm:$0xff]  ;;  %s1484_s26 = sshll.u32 %s230_s24, 6  ;;  %s1384_s7 = scalar_lea.hbm %s2816_s4, %s1512_s30 }
  0x1c   : > { %s1511_s11 = sshll.u32 %s235_s10, 3  ;;  %v374_v11 = vld [vmem:[#allocation2 + $0x3d0] sm:$0xff]  ;;  %v375_v12 = vld [vmem:[#allocation2 + $0x3d8] sm:$0xff]  ;;  %v368_v13 = vld [vmem:[#allocation2 + $0x3a0] sm:$0xff]  ;;  %s2629_s29 = scalar_lea.vmem [#allocation5], %s1484_s26 }
  0x1d   : > { %s1831_s14 = scalar_lea.vmem %s2812_s0, %s1511_s11  ;;  %v369_v14 = vld [vmem:[#allocation2 + $0x3a8] sm:$0xff]  ;;  %v370_v15 = vld [vmem:[#allocation2 + $0x3b0] sm:$0xff]  ;;  %v371_v16 = vld [vmem:[#allocation2 + $0x3b8] sm:$0xff]  ;;  %s1386_s18 = sshll.u32 %s2629_s29, 4  ;;  %s1387_s18 = int_to_ptr.vmem [resolvable:$true] %s1386_s18 }
  0x1e   : > { %v511_v0 = vld [vmem:[%s1831_s14] sm:$0xf]  ;;  %v365_v18 = vld [vmem:[#allocation2 + $0x388] sm:$0xff]  ;;  %v366_v19 = vld [vmem:[#allocation2 + $0x390] sm:$0xff]  ;;  %s1388_s8 = sshll.u32 %s1384_s7, 4  ;;  %s1371_s9 = scalar_lea.sflag [#allocation4], %s230_s24  ;;  %s1389_s8 = int_to_ptr.hbm [resolvable:$true] %s1388_s8 }
  0x1f   : > { %1492 = vmatpush.msk.msra.mxu1 %vm516_vm0, %v511_v0  ;;  %1490 = vmatpush.msk.msra.mxu0 %vm516_vm0, %v511_v0  ;;  %v364_v17 = vld [vmem:[#allocation2 + $0x380] sm:$0xff]  ;;  %v367_v20 = vld [vmem:[#allocation2 + $0x398] sm:$0xff]  ;;  %v361_v22 = vld [vmem:[#allocation2 + $0x368] sm:$0xff]  ;;  %s1669_s10 = sshra.s32 %s1389_s8, 4  ;;  %s1670_s10 = int_to_ptr.hbm [resolvable:$true] %s1669_s10 }
  0x20   : > { %1493 = vmatmul.msk.f32.vlgmr.msra.gmra.mxu1 %vm512_vm1, %v1487_v1  ;;  %1491 = vmatmul.msk.f32.vlgmr.msra.gmra.mxu0 %vm512_vm1, %v244_v2  ;;  %v360_v21 = vld [vmem:[#allocation2 + $0x360] sm:$0xff]  ;;  %v362_v23 = vld [vmem:[#allocation2 + $0x370] sm:$0xff]  ;;  %v363_v24 = vld [vmem:[#allocation2 + $0x378] sm:$0xff]  ;;  %s1671_s11 = scalar_lea.hbm %s1670_s10, 64  ;;  %p1676_p5 = scmp.lt.s32.totalorder %s1670_s10, %s2816_s4 }
  0x21   : > { %1494 = vmatpush.msk.msra.mxu2 %vm516_vm0, %v511_v0  ;;  %1496 = vmatpush.msk.msra.mxu3 %vm516_vm0, %v511_v0  ;;  %v356_v25 = vld [vmem:[#allocation2 + $0x340] sm:$0xff]  ;;  %v357_v26 = vld [vmem:[#allocation2 + $0x348] sm:$0xff]  ;;  %v358_v27 = vld [vmem:[#allocation2 + $0x350] sm:$0xff]  ;;  %p1672_p1 = scmp.ne.s32.totalorder %s1670_s10, %s1671_s11 }
  0x22   : > { %1495 = vmatmul.msk.f32.vlgmr.msra.gmra.mxu2 %vm512_vm1, %v1488_v3  ;;  %1497 = vmatmul.msk.f32.vlgmr.msra.gmra.mxu3 %vm512_vm1, %v1489_v4  ;;  %v359_v28 = vld [vmem:[#allocation2 + $0x358] sm:$0xff]  ;;  %v352_v29 = vld [vmem:[#allocation2 + $0x320] sm:$0xff]  ;;  %v353_v30 = vld [vmem:[#allocation2 + $0x328] sm:$0xff] }
  0x23   : > { %609 = vmatpush.msrb.mxu0 %v376_v5  ;;  %629 = vmatpush.msrb.mxu1 %v377_v6  ;;  %v354_v31 = vld [vmem:[#allocation2 + $0x330] sm:$0xff]  ;;  %v355_v32 = vld [vmem:[#allocation2 + $0x338] sm:$0xff]  ;;  %v348_v33 = vld [vmem:[#allocation2 + $0x300] sm:$0xff]  ;;  %p1673_p2 = pnand %p1672_p1, %p1808_p4 }
  0x24   : > { %649 = vmatpush.msrb.mxu2 %v378_v7  ;;  %669 = vmatpush.msrb.mxu3 %v379_v8  ;;  %v349_v34 = vld [vmem:[#allocation2 + $0x308] sm:$0xff]  ;;  %v350_v35 = vld [vmem:[#allocation2 + $0x310] sm:$0xff]  ;;  %v351_v36 = vld [vmem:[#allocation2 + $0x318] sm:$0xff] }
  0x25   : > { %610 = vmatpush.msrb.mxu0 %v372_v9  ;;  %630 = vmatpush.msrb.mxu1 %v373_v10  ;;  %v344_v37 = vld [vmem:[#allocation2 + $0x2e0] sm:$0xff]  ;;  %v345_v38 = vld [vmem:[#allocation2 + $0x2e8] sm:$0xff]  ;;  %v346_v39 = vld [vmem:[#allocation2 + $0x2f0] sm:$0xff]  ;;  %p1674_p3 = pneg %p1673_p2 }
  0x26   : > { %650 = vmatpush.msrb.mxu2 %v374_v11  ;;  %670 = vmatpush.msrb.mxu3 %v375_v12  ;;  %v347_v40 = vld [vmem:[#allocation2 + $0x2f8] sm:$0xff]  ;;  %v340_v41 = vld [vmem:[#allocation2 + $0x2c0] sm:$0xff]  ;;  %v341_v42 = vld [vmem:[#allocation2 + $0x2c8] sm:$0xff] }
  0x27   : > { %611 = vmatpush.msrb.mxu0 %v368_v13  ;;  %631 = vmatpush.msrb.mxu1 %v369_v14  ;;  %v1854_v43 = vld [vmem:[#allocation2 + $0x2d0] sm:$0xff]  ;;  %v1856_v44 = vld [vmem:[#allocation2 + $0x2d8] sm:$0xff]  ;;  %v1858_v45 = vld [vmem:[#allocation2 + $0x2a0] sm:$0xff] }
  0x28   : > { %651 = vmatpush.msrb.mxu2 %v370_v15  ;;  %671 = vmatpush.msrb.mxu3 %v371_v16  ;;  %v1860_v46 = vld [vmem:[#allocation2 + $0x2a8] sm:$0xff]  ;;  %v1862_v47 = vld [vmem:[#allocation2 + $0x2b0] sm:$0xff]  ;;  %v1864_v48 = vld [vmem:[#allocation2 + $0x2b8] sm:$0xff] }
  0x29   : > { %612 = vmatpush.msrb.mxu0 %v364_v17  ;;  %632 = vmatpush.msrb.mxu1 %v365_v18  ;;  %v1868_v49 = vld [vmem:[#allocation2 + $0x280] sm:$0xff]  ;;  %v1870_v50 = vld [vmem:[#allocation2 + $0x288] sm:$0xff]  ;;  %v1874_v51 = vld [vmem:[#allocation2 + $0x290] sm:$0xff] }
  0x2a   : > { %652 = vmatpush.msrb.mxu2 %v366_v19  ;;  %672 = vmatpush.msrb.mxu3 %v367_v20  ;;  %v1876_v52 = vld [vmem:[#allocation2 + $0x298] sm:$0xff]  ;;  %v1880_v53 = vld [vmem:[#allocation2 + $0x260] sm:$0xff]  ;;  %v1882_v54 = vld [vmem:[#allocation2 + $0x268] sm:$0xff] }
  0x2b   : > { %613 = vmatpush.msrb.mxu0 %v360_v21  ;;  %633 = vmatpush.msrb.mxu1 %v361_v22  ;;  %v1886_v55 = vld [vmem:[#allocation2 + $0x270] sm:$0xff]  ;;  %v1888_v56 = vld [vmem:[#allocation2 + $0x278] sm:$0xff]  ;;  %v1892_v57 = vld [vmem:[#allocation2 + $0x240] sm:$0xff] }
  0x2c   : > { %653 = vmatpush.msrb.mxu2 %v362_v23  ;;  %673 = vmatpush.msrb.mxu3 %v363_v24  ;;  %v1894_v58 = vld [vmem:[#allocation2 + $0x248] sm:$0xff]  ;;  %v1898_v59 = vld [vmem:[#allocation2 + $0x250] sm:$0xff]  ;;  %v1900_v60 = vld [vmem:[#allocation2 + $0x258] sm:$0xff] }
  0x2d   : > { %614 = vmatpush.msrb.mxu0 %v356_v25  ;;  %634 = vmatpush.msrb.mxu1 %v357_v26  ;;  %v1904_v61 = vld [vmem:[#allocation2 + $0x220] sm:$0xff]  ;;  %v1906_v62 = vld [vmem:[#allocation2 + $0x228] sm:$0xff]  ;;  %v1910_v63 = vld [vmem:[#allocation2 + $0x230] sm:$0xff] }
  0x2e   : > { %654 = vmatpush.msrb.mxu2 %v358_v27  ;;  %674 = vmatpush.msrb.mxu3 %v359_v28  ;;  %v1912_v0 = vld [vmem:[#allocation2 + $0x238] sm:$0xff]  ;;  %v1916_v1 = vld [vmem:[#allocation2 + $0x200] sm:$0xff]  ;;  %v1918_v2 = vld [vmem:[#allocation2 + $0x208] sm:$0xff] }
  0x2f   : > { %615 = vmatpush.msrb.mxu0 %v352_v29  ;;  %635 = vmatpush.msrb.mxu1 %v353_v30  ;;  %v1922_v3 = vld [vmem:[#allocation2 + $0x210] sm:$0xff]  ;;  %v1924_v4 = vld [vmem:[#allocation2 + $0x218] sm:$0xff]  ;;  %v1928_v5 = vld [vmem:[#allocation2 + $0x1e0] sm:$0xff] }
  0x30   : > { %655 = vmatpush.msrb.mxu2 %v354_v31  ;;  %675 = vmatpush.msrb.mxu3 %v355_v32  ;;  %v1930_v6 = vld [vmem:[#allocation2 + $0x1e8] sm:$0xff]  ;;  %v1934_v7 = vld [vmem:[#allocation2 + $0x1f0] sm:$0xff]  ;;  %v1936_v8 = vld [vmem:[#allocation2 + $0x1f8] sm:$0xff] }
  0x31   : > { %616 = vmatpush.msrb.mxu0 %v348_v33  ;;  %636 = vmatpush.msrb.mxu1 %v349_v34  ;;  %v1940_v9 = vld [vmem:[#allocation2 + $0x1c0] sm:$0xff]  ;;  %v1942_v10 = vld [vmem:[#allocation2 + $0x1c8] sm:$0xff]  ;;  %v1946_v11 = vld [vmem:[#allocation2 + $0x1d0] sm:$0xff] }
  0x32   : > { %656 = vmatpush.msrb.mxu2 %v350_v35  ;;  %676 = vmatpush.msrb.mxu3 %v351_v36  ;;  %v1948_v12 = vld [vmem:[#allocation2 + $0x1d8] sm:$0xff]  ;;  %v1952_v13 = vld [vmem:[#allocation2 + $0x1a0] sm:$0xff]  ;;  %v1954_v14 = vld [vmem:[#allocation2 + $0x1a8] sm:$0xff] }
  0x33   : > { %617 = vmatpush.msrb.mxu0 %v344_v37  ;;  %637 = vmatpush.msrb.mxu1 %v345_v38  ;;  %v1958_v15 = vld [vmem:[#allocation2 + $0x1b0] sm:$0xff]  ;;  %v1960_v16 = vld [vmem:[#allocation2 + $0x1b8] sm:$0xff]  ;;  %v1964_v17 = vld [vmem:[#allocation2 + $0x180] sm:$0xff] }
  0x34   : > { %657 = vmatpush.msrb.mxu2 %v346_v39  ;;  %677 = vmatpush.msrb.mxu3 %v347_v40  ;;  %v1966_v18 = vld [vmem:[#allocation2 + $0x188] sm:$0xff]  ;;  %v1970_v19 = vld [vmem:[#allocation2 + $0x190] sm:$0xff]  ;;  %v1972_v20 = vld [vmem:[#allocation2 + $0x198] sm:$0xff] }
  0x35   : > { %618 = vmatpush.msrb.mxu0 %v340_v41  ;;  %638 = vmatpush.msrb.mxu1 %v341_v42  ;;  %v1976_v21 = vld [vmem:[#allocation2 + $0x160] sm:$0xff]  ;;  %v1978_v22 = vld [vmem:[#allocation2 + $0x168] sm:$0xff]  ;;  %v1982_v23 = vld [vmem:[#allocation2 + $0x170] sm:$0xff] }
  0x36   : > { %658 = vmatpush.msrb.mxu2 %v1854_v43  ;;  %678 = vmatpush.msrb.mxu3 %v1856_v44  ;;  %v1984_v24 = vld [vmem:[#allocation2 + $0x178] sm:$0xff]  ;;  %v1988_v25 = vld [vmem:[#allocation2 + $0x140] sm:$0xff]  ;;  %v1990_v26 = vld [vmem:[#allocation2 + $0x148] sm:$0xff] }
  0x37   : > { %619 = vmatpush.msrb.mxu0 %v1858_v45  ;;  %639 = vmatpush.msrb.mxu1 %v1860_v46  ;;  %v1994_v27 = vld [vmem:[#allocation2 + $0x150] sm:$0xff]  ;;  %v1996_v28 = vld [vmem:[#allocation2 + $0x158] sm:$0xff]  ;;  %v2000_v29 = vld [vmem:[#allocation2 + $0x120] sm:$0xff] }
  0x38   : > { %659 = vmatpush.msrb.mxu2 %v1862_v47  ;;  %679 = vmatpush.msrb.mxu3 %v1864_v48  ;;  %v2002_v30 = vld [vmem:[#allocation2 + $0x128] sm:$0xff]  ;;  %v2006_v31 = vld [vmem:[#allocation2 + $0x130] sm:$0xff]  ;;  %v2008_v32 = vld [vmem:[#allocation2 + $0x138] sm:$0xff] }
  0x39   : > { %620 = vmatpush.msrb.mxu0 %v1868_v49  ;;  %640 = vmatpush.msrb.mxu1 %v1870_v50  ;;  %2984 = vst [vmem:[#allocation8_spill] sm:$0xff] %v2008_v32  ;;  %v2012_v33 = vld [vmem:[#allocation2 + $0x100] sm:$0xff]  ;;  %v2014_v34 = vld [vmem:[#allocation2 + $0x108] sm:$0xff]  ;;  %v2018_v35 = vld [vmem:[#allocation2 + $0x110] sm:$0xff] }
  0x3a   : > { %660 = vmatpush.msrb.mxu2 %v1874_v51  ;;  %680 = vmatpush.msrb.mxu3 %v1876_v52  ;;  %2985 = vst [vmem:[#allocation9_spill] sm:$0xff] %v2012_v33  ;;  %v2020_v36 = vld [vmem:[#allocation2 + $0x118] sm:$0xff]  ;;  %v2024_v37 = vld [vmem:[#allocation2 + $0xe0] sm:$0xff]  ;;  %v2026_v38 = vld [vmem:[#allocation2 + $0xe8] sm:$0xff] }
  0x3b   : > { %621 = vmatpush.msrb.mxu0 %v1880_v53  ;;  %641 = vmatpush.msrb.mxu1 %v1882_v54  ;;  %2986 = vst [vmem:[#allocation10_spill] sm:$0xff] %v2014_v34  ;;  %v2030_v39 = vld [vmem:[#allocation2 + $0xf0] sm:$0xff]  ;;  %v2032_v40 = vld [vmem:[#allocation2 + $0xf8] sm:$0xff]  ;;  %v2036_v41 = vld [vmem:[#allocation2 + $0xc0] sm:$0xff] }
  0x3c   : > { %661 = vmatpush.msrb.mxu2 %v1886_v55  ;;  %681 = vmatpush.msrb.mxu3 %v1888_v56  ;;  %2987 = vst [vmem:[#allocation11_spill] sm:$0xff] %v2018_v35  ;;  %v2038_v42 = vld [vmem:[#allocation2 + $0xc8] sm:$0xff] }
  0x3d   : > { %622 = vmatpush.msrb.mxu0 %v1892_v57  ;;  %642 = vmatpush.msrb.mxu1 %v1894_v58  ;;  %2988 = vst [vmem:[#allocation12_spill] sm:$0xff] %v2020_v36 }
  0x3e   : > { %662 = vmatpush.msrb.mxu2 %v1898_v59  ;;  %682 = vmatpush.msrb.mxu3 %v1900_v60  ;;  %2989 = vst [vmem:[#allocation13_spill] sm:$0xff] %v2024_v37 }
  0x3f   : > { %623 = vmatpush.msrb.mxu0 %v1904_v61  ;;  %643 = vmatpush.msrb.mxu1 %v1906_v62  ;;  %2990 = vst [vmem:[#allocation14_spill] sm:$0xff] %v2026_v38 }
  0x40   : > { %663 = vmatpush.msrb.mxu2 %v1910_v63  ;;  %683 = vmatpush.msrb.mxu3 %v1912_v0  ;;  %2991 = vst [vmem:[#allocation15_spill] sm:$0xff] %v2030_v39 }
  0x41   : > { %624 = vmatpush.msrb.mxu0 %v1916_v1  ;;  %644 = vmatpush.msrb.mxu1 %v1918_v2  ;;  %2992 = vst [vmem:[#allocation16_spill] sm:$0xff] %v2032_v40 }
  0x42   : > { %664 = vmatpush.msrb.mxu2 %v1922_v3  ;;  %684 = vmatpush.msrb.mxu3 %v1924_v4  ;;  %2993 = vst [vmem:[#allocation17_spill] sm:$0xff] %v2036_v41 }
  0x43   : > { %689 = vmatpush.msra.mxu0 %v1928_v5  ;;  %709 = vmatpush.msra.mxu1 %v1930_v6  ;;  %2994 = vst [vmem:[#allocation18_spill] sm:$0xff] %v2038_v42 }
  0x44   : > { %729 = vmatpush.msra.mxu2 %v1934_v7  ;;  %749 = vmatpush.msra.mxu3 %v1936_v8 }
  0x45   : > { %690 = vmatpush.msra.mxu0 %v1940_v9  ;;  %710 = vmatpush.msra.mxu1 %v1942_v10 }
  0x46   : > { %730 = vmatpush.msra.mxu2 %v1946_v11  ;;  %750 = vmatpush.msra.mxu3 %v1948_v12 }
  0x47   : > { %691 = vmatpush.msra.mxu0 %v1952_v13  ;;  %711 = vmatpush.msra.mxu1 %v1954_v14 }
  0x48   : > { %731 = vmatpush.msra.mxu2 %v1958_v15  ;;  %751 = vmatpush.msra.mxu3 %v1960_v16 }
  0x49   : > { %692 = vmatpush.msra.mxu0 %v1964_v17  ;;  %712 = vmatpush.msra.mxu1 %v1966_v18 }
  0x4a   : > { %732 = vmatpush.msra.mxu2 %v1970_v19  ;;  %752 = vmatpush.msra.mxu3 %v1972_v20 }
  0x4b   : > { %693 = vmatpush.msra.mxu0 %v1976_v21  ;;  %713 = vmatpush.msra.mxu1 %v1978_v22 }
  0x4c   : > { %733 = vmatpush.msra.mxu2 %v1982_v23  ;;  %753 = vmatpush.msra.mxu3 %v1984_v24 }
  0x4d   : > { %694 = vmatpush.msra.mxu0 %v1988_v25  ;;  %714 = vmatpush.msra.mxu1 %v1990_v26 }
  0x4e   : > { %734 = vmatpush.msra.mxu2 %v1994_v27  ;;  %754 = vmatpush.msra.mxu3 %v1996_v28 }
  0x4f   : > { %695 = vmatpush.msra.mxu0 %v2000_v29  ;;  %715 = vmatpush.msra.mxu1 %v2002_v30 }
  0x50   : > { %735 = vmatpush.msra.mxu2 %v2006_v31  ;;  %755 = vmatpush.msra.mxu3 %v2008_v32  ;;  %v2042_v32 = vld [vmem:[#allocation2 + $0xd0] sm:$0xff] }
  0x51   : > { %696 = vmatpush.msra.mxu0 %v2012_v33  ;;  %716 = vmatpush.msra.mxu1 %v2014_v34  ;;  %2995 = vst [vmem:[#allocation19_spill] sm:$0xff] %v2042_v32  ;;  %v2044_v33 = vld [vmem:[#allocation2 + $0xd8] sm:$0xff]  ;;  %v2048_v34 = vld [vmem:[#allocation2 + $0xa0] sm:$0xff] }
  0x52   : > { %736 = vmatpush.msra.mxu2 %v2018_v35  ;;  %756 = vmatpush.msra.mxu3 %v2020_v36  ;;  %2996 = vst [vmem:[#allocation20_spill] sm:$0xff] %v2044_v33  ;;  %v2050_v35 = vld [vmem:[#allocation2 + $0xa8] sm:$0xff]  ;;  %v2054_v36 = vld [vmem:[#allocation2 + $0xb0] sm:$0xff] }
  0x53   : > { %697 = vmatpush.msra.mxu0 %v2024_v37  ;;  %717 = vmatpush.msra.mxu1 %v2026_v38  ;;  %2997 = vst [vmem:[#allocation21_spill] sm:$0xff] %v2048_v34  ;;  %v2056_v37 = vld [vmem:[#allocation2 + $0xb8] sm:$0xff]  ;;  %v2060_v38 = vld [vmem:[#allocation2 + $0x80] sm:$0xff] }
  0x54   : > { %737 = vmatpush.msra.mxu2 %v2030_v39  ;;  %757 = vmatpush.msra.mxu3 %v2032_v40  ;;  %2998 = vst [vmem:[#allocation22_spill] sm:$0xff] %v2050_v35  ;;  %v2062_v39 = vld [vmem:[#allocation2 + $0x88] sm:$0xff]  ;;  %v2066_v40 = vld [vmem:[#allocation2 + $0x90] sm:$0xff] }
  0x55   : > { %698 = vmatpush.msra.mxu0 %v2036_v41  ;;  %718 = vmatpush.msra.mxu1 %v2038_v42  ;;  %2999 = vst [vmem:[#allocation23_spill] sm:$0xff] %v2054_v36  ;;  %v2068_v41 = vld [vmem:[#allocation2 + $0x98] sm:$0xff]  ;;  %v2072_v42 = vld [vmem:[#allocation2 + $0x60] sm:$0xff] }
  0x56   : > { %3000 = vst [vmem:[#allocation24_spill] sm:$0xff] %v2056_v37  ;;  %738 = vmatpush.msra.mxu2 %v2042_v32  ;;  %758 = vmatpush.msra.mxu3 %v2044_v33  ;;  %v2074_v32 = vld [vmem:[#allocation2 + $0x68] sm:$0xff]  ;;  %v2078_v33 = vld [vmem:[#allocation2 + $0x70] sm:$0xff] }
  0x57   : > { %3001 = vst [vmem:[#allocation25_spill] sm:$0xff] %v2060_v38  ;;  %699 = vmatpush.msra.mxu0 %v2048_v34  ;;  %719 = vmatpush.msra.mxu1 %v2050_v35  ;;  %v2080_v34 = vld [vmem:[#allocation2 + $0x78] sm:$0xff]  ;;  %v2084_v35 = vld [vmem:[#allocation2 + $0x40] sm:$0xff] }
  0x58   : > { %3002 = vst [vmem:[#allocation26_spill] sm:$0xff] %v2062_v39  ;;  %739 = vmatpush.msra.mxu2 %v2054_v36  ;;  %759 = vmatpush.msra.mxu3 %v2056_v37  ;;  %v2086_v36 = vld [vmem:[#allocation2 + $0x48] sm:$0xff]  ;;  %v2090_v37 = vld [vmem:[#allocation2 + $0x50] sm:$0xff] }
  0x59   : > { %3003 = vst [vmem:[#allocation27_spill] sm:$0xff] %v2066_v40  ;;  %700 = vmatpush.msra.mxu0 %v2060_v38  ;;  %720 = vmatpush.msra.mxu1 %v2062_v39  ;;  %v2092_v38 = vld [vmem:[#allocation2 + $0x58] sm:$0xff]  ;;  %v2096_v39 = vld [vmem:[#allocation2 + $0x20] sm:$0xff] }
  0x5a   : > { %3004 = vst [vmem:[#allocation28_spill] sm:$0xff] %v2068_v41  ;;  %740 = vmatpush.msra.mxu2 %v2066_v40  ;;  %760 = vmatpush.msra.mxu3 %v2068_v41  ;;  %v2098_v40 = vld [vmem:[#allocation2 + $0x28] sm:$0xff]  ;;  %v2102_v41 = vld [vmem:[#allocation2 + $0x30] sm:$0xff] }
  0x5b   : > { %3005 = vst [vmem:[#allocation29_spill] sm:$0xff] %v2072_v42  ;;  %701 = vmatpush.msra.mxu0 %v2072_v42  ;;  %721 = vmatpush.msra.mxu1 %v2074_v32  ;;  %v2104_v42 = vld [vmem:[#allocation2 + $0x38] sm:$0xff] }
  0x5c   : > { %3006 = vst [vmem:[#allocation30_spill] sm:$0xff] %v2074_v32  ;;  %741 = vmatpush.msra.mxu2 %v2078_v33  ;;  %761 = vmatpush.msra.mxu3 %v2080_v34  ;;  %v2146_v32 = vld [vmem:[#allocation2 + $0x5a8] sm:$0xff] }
  0x5d   : > { %3007 = vst [vmem:[#allocation31_spill] sm:$0xff] %v2078_v33  ;;  %702 = vmatpush.msra.mxu0 %v2084_v35  ;;  %722 = vmatpush.msra.mxu1 %v2086_v36  ;;  %v2144_v33 = vld [vmem:[#allocation2 + $0x5a0] sm:$0xff] }
  0x5e   : > { %3008 = vst [vmem:[#allocation32_spill] sm:$0xff] %v2080_v34  ;;  %742 = vmatpush.msra.mxu2 %v2090_v37  ;;  %762 = vmatpush.msra.mxu3 %v2092_v38  ;;  %v2112_v34 = vld [vmem:[#allocation2] sm:$0xff] }
  0x5f   : > { %3009 = vst [vmem:[#allocation33_spill] sm:$0xff] %v2084_v35  ;;  %703 = vmatpush.msra.mxu0 %v2096_v39  ;;  %723 = vmatpush.msra.mxu1 %v2098_v40  ;;  %v2114_v35 = vld [vmem:[#allocation2 + $0x8] sm:$0xff] }
  0x60   : > { %3010 = vst [vmem:[#allocation34_spill] sm:$0xff] %v2086_v36  ;;  %743 = vmatpush.msra.mxu2 %v2102_v41  ;;  %763 = vmatpush.msra.mxu3 %v2104_v42  ;;  %v2116_v36 = vld [vmem:[#allocation2 + $0x10] sm:$0xff] }
  0x61   : > { %3011 = vst [vmem:[#allocation35_spill] sm:$0xff] %v2090_v37  ;;  %704 = vmatpush.msra.mxu0 %v2112_v34  ;;  %724 = vmatpush.msra.mxu1 %v2114_v35  ;;  %v2120_v37 = vld [vmem:[#allocation2 + $0x18] sm:$0xff] }
  0x62   : > { %3012 = vst [vmem:[#allocation36_spill] sm:$0xff] %v2092_v38  ;;  %744 = vmatpush.msra.mxu2 %v2116_v36  ;;  %764 = vmatpush.msra.mxu3 %v2120_v37  ;;  %v2130_v38 = vld [vmem:[#allocation2 + $0x5f8] sm:$0xff] }
  0x63   : > { %3013 = vst [vmem:[#allocation37_spill] sm:$0xff] %v2096_v39  ;;  %v2128_v39 = vld [vmem:[#allocation2 + $0x5f0] sm:$0xff] }
  0x64   : > { %3014 = vst [vmem:[#allocation38_spill] sm:$0xff] %v2098_v40 }
  0x65   : > { %3015 = vst [vmem:[#allocation39_spill] sm:$0xff] %v2102_v41  ;;  %v2124_v41 = vld [vmem:[#allocation2 + $0x5e0] sm:$0xff] }
  0x66   : > { %3016 = vst [vmem:[#allocation40_spill] sm:$0xff] %v2104_v42  ;;  %v2126_v42 = vld [vmem:[#allocation2 + $0x5e8] sm:$0xff] }
  0x67   : > { %3017 = vst [vmem:[#allocation41_spill] sm:$0xff] %v2112_v34  ;;  %v2134_v34 = vld [vmem:[#allocation2 + $0x5c8] sm:$0xff] }
  0x68   : > { %3018 = vst [vmem:[#allocation42_spill] sm:$0xff] %v2114_v35  ;;  %v2132_v35 = vld [vmem:[#allocation2 + $0x5c0] sm:$0xff] }
  0x69   : > { %3019 = vst [vmem:[#allocation43_spill] sm:$0xff] %v2116_v36  ;;  %v2140_v36 = vld [vmem:[#allocation2 + $0x5d8] sm:$0xff] }
  0x6a   : > { %3020 = vst [vmem:[#allocation44_spill] sm:$0xff] %v2120_v37  ;;  %v2138_v37 = vld [vmem:[#allocation2 + $0x5d0] sm:$0xff] }
  0x6b   : > { %3021 = vst [vmem:[#allocation45_spill] sm:$0xff] %v2124_v41 }
  0x6c   : > { %3022 = vst [vmem:[#allocation46_spill] sm:$0xff] %v2126_v42 }
  0x6d   : > { %3023 = vst [vmem:[#allocation47_spill] sm:$0xff] %v2128_v39 }
  0x6e   : > { %3024 = vst [vmem:[#allocation48_spill] sm:$0xff] %v2130_v38 }
  0x6f   : > { %3025 = vst [vmem:[#allocation49_spill] sm:$0xff] %v2132_v35 }
  0x70   : > { %3026 = vst [vmem:[#allocation50_spill] sm:$0xff] %v2134_v34 }
  0x71   : > { %3027 = vst [vmem:[#allocation51_spill] sm:$0xff] %v2138_v37 }
  0x72   : > { %3028 = vst [vmem:[#allocation52_spill] sm:$0xff] %v2140_v36 }
  0x73   : > { %3029 = vst [vmem:[#allocation53_spill] sm:$0xff] %v2144_v33 }
  0x74   : > { %3030 = vst [vmem:[#allocation54_spill] sm:$0xff] %v2146_v32 }
  0x9d   : > { %v560_v40 = vpop.f32.mrf.mxu1 }
  0x9e   : > { %625 = vmatmul.f32.vlgmr.msrb.gmra.mxu0 %v560_v40  ;;  %645 = vmatmul.f32.vlgmr.msrb.gmra.mxu1 %v560_v40 }
  0x9f   : > { %665 = vmatmul.f32.vlgmr.msrb.gmra.mxu2 %v560_v40  ;;  %685 = vmatmul.f32.vlgmr.msrb.gmra.mxu3 %v560_v40  ;;  %v2150_v40 = vld [vmem:[#allocation2 + $0x5b0] sm:$0xff] }
  0xa0   : > { %769 = vmatpush.msrb.mxu0 %v2124_v41  ;;  %789 = vmatpush.msrb.mxu1 %v2126_v42  ;;  %3031 = vst [vmem:[#allocation55_spill] sm:$0xff] %v2150_v40  ;;  %v2152_v41 = vld [vmem:[#allocation2 + $0x5b8] sm:$0xff]  ;;  %v2156_v42 = vld [vmem:[#allocation2 + $0x580] sm:$0xff] }
  0xa1   : > { %809 = vmatpush.msrb.mxu2 %v2128_v39  ;;  %829 = vmatpush.msrb.mxu3 %v2130_v38  ;;  %3032 = vst [vmem:[#allocation56_spill] sm:$0xff] %v2152_v41  ;;  %v2158_v39 = vld [vmem:[#allocation2 + $0x588] sm:$0xff]  ;;  %v2162_v38 = vld [vmem:[#allocation2 + $0x590] sm:$0xff] }
  0xa2   : > { %770 = vmatpush.msrb.mxu0 %v2132_v35  ;;  %790 = vmatpush.msrb.mxu1 %v2134_v34  ;;  %3033 = vst [vmem:[#allocation57_spill] sm:$0xff] %v2156_v42  ;;  %v2164_v35 = vld [vmem:[#allocation2 + $0x598] sm:$0xff]  ;;  %v537_v34 = vpop.f32.mrf.mxu0 }
  0xa3   : > { %810 = vmatpush.msrb.mxu2 %v2138_v37  ;;  %830 = vmatpush.msrb.mxu3 %v2140_v36  ;;  %3034 = vst [vmem:[#allocation58_spill] sm:$0xff] %v2158_v39  ;;  %v2176_v36 = vld [vmem:[#allocation2 + $0x570] sm:$0xff]  ;;  %v2194_v37 = vld [vmem:[#allocation2 + $0x528] sm:$0xff] }
  0xa4   : > { %771 = vmatpush.msrb.mxu0 %v2144_v33  ;;  %791 = vmatpush.msrb.mxu1 %v2146_v32  ;;  %3035 = vst [vmem:[#allocation59_spill] sm:$0xff] %v2162_v38  ;;  %v2172_v33 = vld [vmem:[#allocation2 + $0x560] sm:$0xff]  ;;  %v2174_v32 = vld [vmem:[#allocation2 + $0x568] sm:$0xff] }
  0xa5   : > { %3036 = vst [vmem:[#allocation60_spill] sm:$0xff] %v2164_v35  ;;  %811 = vmatpush.msrb.mxu2 %v2150_v40  ;;  %831 = vmatpush.msrb.mxu3 %v2152_v41  ;;  %v2178_v40 = vld [vmem:[#allocation2 + $0x578] sm:$0xff]  ;;  %v2180_v41 = vld [vmem:[#allocation2 + $0x540] sm:$0xff] }
  0xa6   : > { %772 = vmatpush.msrb.mxu0 %v2156_v42  ;;  %792 = vmatpush.msrb.mxu1 %v2158_v39  ;;  %3037 = vst [vmem:[#allocation61_spill] sm:$0xff] %v2172_v33  ;;  %v2182_v42 = vld [vmem:[#allocation2 + $0x548] sm:$0xff]  ;;  %v2192_v39 = vld [vmem:[#allocation2 + $0x520] sm:$0xff] }
  0xa7   : > { %812 = vmatpush.msrb.mxu2 %v2162_v38  ;;  %832 = vmatpush.msrb.mxu3 %v2164_v35  ;;  %3038 = vst [vmem:[#allocation62_spill] sm:$0xff] %v2174_v32  ;;  %v2186_v35 = vld [vmem:[#allocation2 + $0x550] sm:$0xff]  ;;  %v2188_v38 = vld [vmem:[#allocation2 + $0x558] sm:$0xff] }
  0xa8   : > { %705 = vmatmul.f32.vlgmr.msra.gmra.mxu0 %v537_v34  ;;  %725 = vmatmul.f32.vlgmr.msra.gmra.mxu1 %v537_v34  ;;  %3039 = vst [vmem:[#allocation63_spill] sm:$0xff] %v2176_v36 }
  0xa9   : > { %3040 = vst [vmem:[#allocation64_spill] sm:$0xff] %v2178_v40  ;;  %745 = vmatmul.f32.vlgmr.msra.gmra.mxu2 %v537_v34  ;;  %765 = vmatmul.f32.vlgmr.msra.gmra.mxu3 %v537_v34  ;;  %v2198_v34 = vld [vmem:[#allocation2 + $0x530] sm:$0xff] }
  0xaa   : > { %3041 = vst [vmem:[#allocation65_spill] sm:$0xff] %v2180_v41  ;;  %773 = vmatpush.msrb.mxu0 %v2172_v33  ;;  %793 = vmatpush.msrb.mxu1 %v2174_v32  ;;  %v2200_v33 = vld [vmem:[#allocation2 + $0x538] sm:$0xff]  ;;  %v2204_v32 = vld [vmem:[#allocation2 + $0x500] sm:$0xff] }
  0xab   : > { %3042 = vst [vmem:[#allocation66_spill] sm:$0xff] %v2182_v42  ;;  %813 = vmatpush.msrb.mxu2 %v2176_v36  ;;  %833 = vmatpush.msrb.mxu3 %v2178_v40  ;;  %v2206_v36 = vld [vmem:[#allocation2 + $0x508] sm:$0xff]  ;;  %v2210_v40 = vld [vmem:[#allocation2 + $0x510] sm:$0xff] }
  0xac   : > { %3043 = vst [vmem:[#allocation67_spill] sm:$0xff] %v2186_v35  ;;  %774 = vmatpush.msrb.mxu0 %v2180_v41  ;;  %794 = vmatpush.msrb.mxu1 %v2182_v42  ;;  %v2212_v41 = vld [vmem:[#allocation2 + $0x518] sm:$0xff]  ;;  %v2216_v42 = vld [vmem:[#allocation2 + $0x4e0] sm:$0xff] }
  0xad   : > { %3044 = vst [vmem:[#allocation68_spill] sm:$0xff] %v2188_v38  ;;  %814 = vmatpush.msrb.mxu2 %v2186_v35  ;;  %834 = vmatpush.msrb.mxu3 %v2188_v38  ;;  %v2218_v35 = vld [vmem:[#allocation2 + $0x4e8] sm:$0xff]  ;;  %v2222_v38 = vld [vmem:[#allocation2 + $0x4f0] sm:$0xff] }
  0xae   : > { %3045 = vst [vmem:[#allocation69_spill] sm:$0xff] %v2192_v39  ;;  %775 = vmatpush.msrb.mxu0 %v2192_v39  ;;  %795 = vmatpush.msrb.mxu1 %v2194_v37  ;;  %v2224_v39 = vld [vmem:[#allocation2 + $0x4f8] sm:$0xff] }
  0xaf   : > { %3046 = vst [vmem:[#allocation70_spill] sm:$0xff] %v2194_v37  ;;  %815 = vmatpush.msrb.mxu2 %v2198_v34  ;;  %835 = vmatpush.msrb.mxu3 %v2200_v33  ;;  %v2228_v37 = vld [vmem:[#allocation2 + $0x4c0] sm:$0xff] }
  0xb0   : > { %3047 = vst [vmem:[#allocation71_spill] sm:$0xff] %v2198_v34  ;;  %776 = vmatpush.msrb.mxu0 %v2204_v32  ;;  %796 = vmatpush.msrb.mxu1 %v2206_v36  ;;  %v2230_v34 = vld [vmem:[#allocation2 + $0x4c8] sm:$0xff] }
  0xb1   : > { %3048 = vst [vmem:[#allocation72_spill] sm:$0xff] %v2200_v33  ;;  %816 = vmatpush.msrb.mxu2 %v2210_v40  ;;  %836 = vmatpush.msrb.mxu3 %v2212_v41  ;;  %v2234_v33 = vld [vmem:[#allocation2 + $0x4d0] sm:$0xff] }
  0xb2   : > { %3049 = vst [vmem:[#allocation73_spill] sm:$0xff] %v2204_v32  ;;  %777 = vmatpush.msrb.mxu0 %v2216_v42  ;;  %797 = vmatpush.msrb.mxu1 %v2218_v35  ;;  %v2236_v32 = vld [vmem:[#allocation2 + $0x4d8] sm:$0xff] }
  0xb3   : > { %3050 = vst [vmem:[#allocation74_spill] sm:$0xff] %v2206_v36  ;;  %817 = vmatpush.msrb.mxu2 %v2222_v38  ;;  %837 = vmatpush.msrb.mxu3 %v2224_v39  ;;  %v2240_v36 = vld [vmem:[#allocation2 + $0x4a0] sm:$0xff] }
  0xb4   : > { %3051 = vst [vmem:[#allocation75_spill] sm:$0xff] %v2210_v40  ;;  %v2242_v40 = vld [vmem:[#allocation2 + $0x4a8] sm:$0xff]  ;;  %778 = vmatpush.msrb.mxu0 %v2228_v37  ;;  %798 = vmatpush.msrb.mxu1 %v2230_v34 }
  0xb5   : > { %3052 = vst [vmem:[#allocation76_spill] sm:$0xff] %v2212_v41  ;;  %v2246_v41 = vld [vmem:[#allocation2 + $0x4b0] sm:$0xff]  ;;  %818 = vmatpush.msrb.mxu2 %v2234_v33  ;;  %838 = vmatpush.msrb.mxu3 %v2236_v32 }
  0xb6   : > { %3053 = vst [vmem:[#allocation77_spill] sm:$0xff] %v2216_v42  ;;  %v2248_v42 = vld [vmem:[#allocation2 + $0x4b8] sm:$0xff]  ;;  %779 = vmatpush.msrb.mxu0 %v2240_v36  ;;  %799 = vmatpush.msrb.mxu1 %v2242_v40 }
  0xb7   : > { %3054 = vst [vmem:[#allocation78_spill] sm:$0xff] %v2218_v35  ;;  %v2252_v35 = vld [vmem:[#allocation2 + $0x480] sm:$0xff]  ;;  %819 = vmatpush.msrb.mxu2 %v2246_v41  ;;  %839 = vmatpush.msrb.mxu3 %v2248_v42 }
  0xb8   : > { %3055 = vst [vmem:[#allocation79_spill] sm:$0xff] %v2222_v38  ;;  %v2254_v38 = vld [vmem:[#allocation2 + $0x488] sm:$0xff]  ;;  %780 = vmatpush.msrb.mxu0 %v2252_v35 }
  0xb9   : > { %3056 = vst [vmem:[#allocation80_spill] sm:$0xff] %v2224_v39  ;;  %v2258_v39 = vld [vmem:[#allocation2 + $0x490] sm:$0xff]  ;;  %800 = vmatpush.msrb.mxu1 %v2254_v38 }
  0xba   : > { %3057 = vst [vmem:[#allocation81_spill] sm:$0xff] %v2228_v37  ;;  %v2260_v37 = vld [vmem:[#allocation2 + $0x498] sm:$0xff]  ;;  %820 = vmatpush.msrb.mxu2 %v2258_v39 }
  0xbb   : > { %3058 = vst [vmem:[#allocation82_spill] sm:$0xff] %v2230_v34  ;;  %v2264_v34 = vld [vmem:[#allocation2 + $0x460] sm:$0xff]  ;;  %840 = vmatpush.msrb.mxu3 %v2260_v37 }
  0xbc   : > { %3059 = vst [vmem:[#allocation83_spill] sm:$0xff] %v2234_v33  ;;  %v2266_v33 = vld [vmem:[#allocation2 + $0x468] sm:$0xff]  ;;  %781 = vmatpush.msrb.mxu0 %v2264_v34 }
  0xbd   : > { %3060 = vst [vmem:[#allocation84_spill] sm:$0xff] %v2236_v32  ;;  %v2270_v32 = vld [vmem:[#allocation2 + $0x470] sm:$0xff]  ;;  %801 = vmatpush.msrb.mxu1 %v2266_v33 }
  0xbe   : > { %3061 = vst [vmem:[#allocation85_spill] sm:$0xff] %v2240_v36  ;;  %v2272_v36 = vld [vmem:[#allocation2 + $0x478] sm:$0xff]  ;;  %821 = vmatpush.msrb.mxu2 %v2270_v32 }
  0xbf   : > { %3062 = vst [vmem:[#allocation86_spill] sm:$0xff] %v2242_v40  ;;  %v2276_v40 = vld [vmem:[#allocation2 + $0x440] sm:$0xff]  ;;  %841 = vmatpush.msrb.mxu3 %v2272_v36 }
  0xc0   : > { %3063 = vst [vmem:[#allocation87_spill] sm:$0xff] %v2246_v41  ;;  %v2278_v41 = vld [vmem:[#allocation2 + $0x448] sm:$0xff]  ;;  %782 = vmatpush.msrb.mxu0 %v2276_v40 }
  0xc1   : > { %3064 = vst [vmem:[#allocation88_spill] sm:$0xff] %v2248_v42  ;;  %v2282_v42 = vld [vmem:[#allocation2 + $0x450] sm:$0xff]  ;;  %802 = vmatpush.msrb.mxu1 %v2278_v41 }
  0xc2   : > { %3065 = vst [vmem:[#allocation89_spill] sm:$0xff] %v2252_v35  ;;  %v2284_v35 = vld [vmem:[#allocation2 + $0x458] sm:$0xff]  ;;  %822 = vmatpush.msrb.mxu2 %v2282_v42 }
  0xc3   : > { %3066 = vst [vmem:[#allocation90_spill] sm:$0xff] %v2254_v38  ;;  %v2288_v38 = vld [vmem:[#allocation2 + $0x420] sm:$0xff]  ;;  %842 = vmatpush.msrb.mxu3 %v2284_v35 }
  0xc4   : > { %3067 = vst [vmem:[#allocation91_spill] sm:$0xff] %v2258_v39  ;;  %v2290_v39 = vld [vmem:[#allocation2 + $0x428] sm:$0xff]  ;;  %783 = vmatpush.msrb.mxu0 %v2288_v38 }
  0xc5   : > { %3068 = vst [vmem:[#allocation92_spill] sm:$0xff] %v2260_v37  ;;  %v2294_v37 = vld [vmem:[#allocation2 + $0x430] sm:$0xff]  ;;  %803 = vmatpush.msrb.mxu1 %v2290_v39 }
  0xc6   : > { %3069 = vst [vmem:[#allocation93_spill] sm:$0xff] %v2264_v34  ;;  %v2296_v34 = vld [vmem:[#allocation2 + $0x438] sm:$0xff]  ;;  %823 = vmatpush.msrb.mxu2 %v2294_v37 }
  0xc7   : > { %3070 = vst [vmem:[#allocation94_spill] sm:$0xff] %v2266_v33  ;;  %v2300_v33 = vld [vmem:[#allocation2 + $0x400] sm:$0xff]  ;;  %843 = vmatpush.msrb.mxu3 %v2296_v34 }
  0xc8   : > { %3071 = vst [vmem:[#allocation95_spill] sm:$0xff] %v2270_v32  ;;  %v2302_v32 = vld [vmem:[#allocation2 + $0x408] sm:$0xff]  ;;  %784 = vmatpush.msrb.mxu0 %v2300_v33 }
  0xc9   : > { %3072 = vst [vmem:[#allocation96_spill] sm:$0xff] %v2272_v36  ;;  %v2306_v36 = vld [vmem:[#allocation2 + $0x410] sm:$0xff]  ;;  %804 = vmatpush.msrb.mxu1 %v2302_v32 }
  0xca   : > { %3073 = vst [vmem:[#allocation97_spill] sm:$0xff] %v2276_v40  ;;  %v2308_v40 = vld [vmem:[#allocation2 + $0x418] sm:$0xff]  ;;  %824 = vmatpush.msrb.mxu2 %v2306_v36 }
  0xcb   : > { %3074 = vst [vmem:[#allocation98_spill] sm:$0xff] %v2278_v41  ;;  %v583_v41 = vpop.f32.mrf.mxu2  ;;  %844 = vmatpush.msrb.mxu3 %v2308_v40 }
  0xcc   : > { %3075 = vst [vmem:[#allocation99_spill] sm:$0xff] %v2282_v42  ;;  %785 = vmatmul.f32.vlgmr.msrb.gmra.mxu0 %v583_v41  ;;  %805 = vmatmul.f32.vlgmr.msrb.gmra.mxu1 %v583_v41  ;;  %v2338_v42 = vld [vmem:[#allocation2 + $0x7a8] sm:$0xff] }
  0xcd   : > { %3076 = vst [vmem:[#allocation100_spill] sm:$0xff] %v2284_v35  ;;  %v2320_v35 = vld [vmem:[#allocation2 + $0x7f0] sm:$0xff]  ;;  %825 = vmatmul.f32.vlgmr.msrb.gmra.mxu2 %v583_v41  ;;  %845 = vmatmul.f32.vlgmr.msrb.gmra.mxu3 %v583_v41 }
  0xce   : > { %3077 = vst [vmem:[#allocation101_spill] sm:$0xff] %v2288_v38  ;;  %v2316_v38 = vld [vmem:[#allocation2 + $0x7e0] sm:$0xff]  ;;  %893 = vmatpush.msra.mxu2 %v2320_v35  ;;  %v2342_v41 = vld [vmem:[#allocation2 + $0x7b0] sm:$0xff] }
  0xcf   : > { %3078 = vst [vmem:[#allocation102_spill] sm:$0xff] %v2290_v39  ;;  %v2318_v39 = vld [vmem:[#allocation2 + $0x7e8] sm:$0xff]  ;;  %853 = vmatpush.msra.mxu0 %v2316_v38 }
  0xd0   : > { %3079 = vst [vmem:[#allocation103_spill] sm:$0xff] %v2294_v37  ;;  %v2322_v37 = vld [vmem:[#allocation2 + $0x7f8] sm:$0xff]  ;;  %873 = vmatpush.msra.mxu1 %v2318_v39 }
  0xd1   : > { %3080 = vst [vmem:[#allocation104_spill] sm:$0xff] %v2296_v34  ;;  %v2324_v34 = vld [vmem:[#allocation2 + $0x7c0] sm:$0xff]  ;;  %913 = vmatpush.msra.mxu3 %v2322_v37 }
  0xd2   : > { %3081 = vst [vmem:[#allocation105_spill] sm:$0xff] %v2300_v33  ;;  %v2326_v33 = vld [vmem:[#allocation2 + $0x7c8] sm:$0xff]  ;;  %854 = vmatpush.msra.mxu0 %v2324_v34 }
  0xd3   : > { %3082 = vst [vmem:[#allocation106_spill] sm:$0xff] %v2302_v32  ;;  %v2336_v32 = vld [vmem:[#allocation2 + $0x7a0] sm:$0xff]  ;;  %874 = vmatpush.msra.mxu1 %v2326_v33 }
  0xd4   : > { %3083 = vst [vmem:[#allocation107_spill] sm:$0xff] %v2306_v36  ;;  %v2332_v36 = vld [vmem:[#allocation2 + $0x7d8] sm:$0xff]  ;;  %855 = vmatpush.msra.mxu0 %v2336_v32 }
  0xd5   : > { %3084 = vst [vmem:[#allocation108_spill] sm:$0xff] %v2308_v40  ;;  %v2330_v40 = vld [vmem:[#allocation2 + $0x7d0] sm:$0xff]  ;;  %914 = vmatpush.msra.mxu3 %v2332_v36  ;;  %875 = vmatpush.msra.mxu1 %v2338_v42 }
  0xd6   : > { %3085 = vst [vmem:[#allocation109_spill] sm:$0xff] %v2316_v38  ;;  %v2344_v38 = vld [vmem:[#allocation2 + $0x7b8] sm:$0xff]  ;;  %894 = vmatpush.msra.mxu2 %v2330_v40 }
  0xd7   : > { %3086 = vst [vmem:[#allocation110_spill] sm:$0xff] %v2318_v39  ;;  %v2348_v39 = vld [vmem:[#allocation2 + $0x780] sm:$0xff]  ;;  %915 = vmatpush.msra.mxu3 %v2344_v38 }
  0xd8   : > { %3087 = vst [vmem:[#allocation111_spill] sm:$0xff] %v2320_v35  ;;  %v2350_v35 = vld [vmem:[#allocation2 + $0x788] sm:$0xff]  ;;  %895 = vmatpush.msra.mxu2 %v2342_v41  ;;  %856 = vmatpush.msra.mxu0 %v2348_v39 }
  0xd9   : > { %3088 = vst [vmem:[#allocation112_spill] sm:$0xff] %v2322_v37  ;;  %v2354_v37 = vld [vmem:[#allocation2 + $0x790] sm:$0xff]  ;;  %876 = vmatpush.msra.mxu1 %v2350_v35 }
  0xda   : > { %3089 = vst [vmem:[#allocation113_spill] sm:$0xff] %v2324_v34  ;;  %v2356_v34 = vld [vmem:[#allocation2 + $0x798] sm:$0xff]  ;;  %896 = vmatpush.msra.mxu2 %v2354_v37 }
  0xdb   : > { %3090 = vst [vmem:[#allocation114_spill] sm:$0xff] %v2326_v33  ;;  %v2360_v33 = vld [vmem:[#allocation2 + $0x760] sm:$0xff]  ;;  %916 = vmatpush.msra.mxu3 %v2356_v34 }
  0xdc   : > { %3091 = vst [vmem:[#allocation115_spill] sm:$0xff] %v2330_v40  ;;  %v2362_v40 = vld [vmem:[#allocation2 + $0x768] sm:$0xff]  ;;  %857 = vmatpush.msra.mxu0 %v2360_v33 }
  0xdd   : > { %3092 = vst [vmem:[#allocation116_spill] sm:$0xff] %v2332_v36  ;;  %v2366_v36 = vld [vmem:[#allocation2 + $0x770] sm:$0xff]  ;;  %877 = vmatpush.msra.mxu1 %v2362_v40 }
  0xde   : > { %3093 = vst [vmem:[#allocation117_spill] sm:$0xff] %v2336_v32  ;;  %v2368_v32 = vld [vmem:[#allocation2 + $0x778] sm:$0xff]  ;;  %897 = vmatpush.msra.mxu2 %v2366_v36 }
  0xdf   : > { %3094 = vst [vmem:[#allocation118_spill] sm:$0xff] %v2338_v42  ;;  %v2372_v42 = vld [vmem:[#allocation2 + $0x740] sm:$0xff]  ;;  %917 = vmatpush.msra.mxu3 %v2368_v32 }
  0xe0   : > { %3095 = vst [vmem:[#allocation119_spill] sm:$0xff] %v2342_v41  ;;  %v2374_v41 = vld [vmem:[#allocation2 + $0x748] sm:$0xff]  ;;  %858 = vmatpush.msra.mxu0 %v2372_v42 }
  0xe1   : > { %3096 = vst [vmem:[#allocation120_spill] sm:$0xff] %v2344_v38  ;;  %v2378_v38 = vld [vmem:[#allocation2 + $0x750] sm:$0xff]  ;;  %878 = vmatpush.msra.mxu1 %v2374_v41 }
  0xe2   : > { %3097 = vst [vmem:[#allocation121_spill] sm:$0xff] %v2348_v39  ;;  %v2380_v39 = vld [vmem:[#allocation2 + $0x758] sm:$0xff]  ;;  %898 = vmatpush.msra.mxu2 %v2378_v38 }
  0xe3   : > { %3098 = vst [vmem:[#allocation122_spill] sm:$0xff] %v2350_v35  ;;  %v2384_v35 = vld [vmem:[#allocation2 + $0x720] sm:$0xff]  ;;  %918 = vmatpush.msra.mxu3 %v2380_v39 }
  0xe4   : > { %3099 = vst [vmem:[#allocation123_spill] sm:$0xff] %v2354_v37  ;;  %v2386_v37 = vld [vmem:[#allocation2 + $0x728] sm:$0xff]  ;;  %859 = vmatpush.msra.mxu0 %v2384_v35 }
  0xe5   : > { %3100 = vst [vmem:[#allocation124_spill] sm:$0xff] %v2356_v34  ;;  %v2390_v34 = vld [vmem:[#allocation2 + $0x730] sm:$0xff]  ;;  %879 = vmatpush.msra.mxu1 %v2386_v37 }
  0xe6   : > { %3101 = vst [vmem:[#allocation125_spill] sm:$0xff] %v2360_v33  ;;  %v2392_v33 = vld [vmem:[#allocation2 + $0x738] sm:$0xff]  ;;  %899 = vmatpush.msra.mxu2 %v2390_v34 }
  0xe7   : > { %3102 = vst [vmem:[#allocation126_spill] sm:$0xff] %v2362_v40  ;;  %v2396_v40 = vld [vmem:[#allocation2 + $0x700] sm:$0xff]  ;;  %919 = vmatpush.msra.mxu3 %v2392_v33 }
  0xe8   : > { %3103 = vst [vmem:[#allocation127_spill] sm:$0xff] %v2366_v36  ;;  %v2398_v36 = vld [vmem:[#allocation2 + $0x708] sm:$0xff]  ;;  %860 = vmatpush.msra.mxu0 %v2396_v40 }
  0xe9   : > { %3104 = vst [vmem:[#allocation128_spill] sm:$0xff] %v2368_v32  ;;  %v2402_v32 = vld [vmem:[#allocation2 + $0x710] sm:$0xff]  ;;  %880 = vmatpush.msra.mxu1 %v2398_v36 }
  0xea   : > { %3105 = vst [vmem:[#allocation129_spill] sm:$0xff] %v2372_v42  ;;  %v2404_v42 = vld [vmem:[#allocation2 + $0x718] sm:$0xff]  ;;  %900 = vmatpush.msra.mxu2 %v2402_v32 }
  0xeb   : > { %3106 = vst [vmem:[#allocation130_spill] sm:$0xff] %v2374_v41  ;;  %v2408_v41 = vld [vmem:[#allocation2 + $0x6e0] sm:$0xff]  ;;  %920 = vmatpush.msra.mxu3 %v2404_v42 }
  0xec   : > { %3107 = vst [vmem:[#allocation131_spill] sm:$0xff] %v2378_v38  ;;  %v2410_v38 = vld [vmem:[#allocation2 + $0x6e8] sm:$0xff]  ;;  %861 = vmatpush.msra.mxu0 %v2408_v41 }
  0xed   : > { %3108 = vst [vmem:[#allocation132_spill] sm:$0xff] %v2380_v39  ;;  %v2414_v39 = vld [vmem:[#allocation2 + $0x6f0] sm:$0xff]  ;;  %881 = vmatpush.msra.mxu1 %v2410_v38 }
  0xee   : > { %3109 = vst [vmem:[#allocation133_spill] sm:$0xff] %v2384_v35  ;;  %v2416_v35 = vld [vmem:[#allocation2 + $0x6f8] sm:$0xff]  ;;  %901 = vmatpush.msra.mxu2 %v2414_v39 }
  0xef   : > { %3110 = vst [vmem:[#allocation134_spill] sm:$0xff] %v2386_v37  ;;  %v2420_v37 = vld [vmem:[#allocation2 + $0x6c0] sm:$0xff]  ;;  %921 = vmatpush.msra.mxu3 %v2416_v35 }
  0xf0   : > { %3111 = vst [vmem:[#allocation135_spill] sm:$0xff] %v2390_v34  ;;  %v2422_v34 = vld [vmem:[#allocation2 + $0x6c8] sm:$0xff]  ;;  %862 = vmatpush.msra.mxu0 %v2420_v37 }
  0xf1   : > { %3112 = vst [vmem:[#allocation136_spill] sm:$0xff] %v2392_v33  ;;  %v2426_v33 = vld [vmem:[#allocation2 + $0x6d0] sm:$0xff]  ;;  %882 = vmatpush.msra.mxu1 %v2422_v34 }
  0xf2   : > { %3113 = vst [vmem:[#allocation137_spill] sm:$0xff] %v2396_v40  ;;  %v2428_v40 = vld [vmem:[#allocation2 + $0x6d8] sm:$0xff]  ;;  %902 = vmatpush.msra.mxu2 %v2426_v33 }
  0xf3   : > { %3114 = vst [vmem:[#allocation138_spill] sm:$0xff] %v2398_v36  ;;  %v2432_v36 = vld [vmem:[#allocation2 + $0x6a0] sm:$0xff]  ;;  %922 = vmatpush.msra.mxu3 %v2428_v40 }
  0xf4   : > { %3115 = vst [vmem:[#allocation139_spill] sm:$0xff] %v2402_v32  ;;  %v2434_v32 = vld [vmem:[#allocation2 + $0x6a8] sm:$0xff]  ;;  %863 = vmatpush.msra.mxu0 %v2432_v36 }
  0xf5   : > { %3116 = vst [vmem:[#allocation140_spill] sm:$0xff] %v2404_v42  ;;  %v2438_v42 = vld [vmem:[#allocation2 + $0x6b0] sm:$0xff]  ;;  %883 = vmatpush.msra.mxu1 %v2434_v32 }
  0xf6   : > { %3117 = vst [vmem:[#allocation141_spill] sm:$0xff] %v2408_v41  ;;  %v2440_v41 = vld [vmem:[#allocation2 + $0x6b8] sm:$0xff]  ;;  %903 = vmatpush.msra.mxu2 %v2438_v42 }
  0xf7   : > { %3118 = vst [vmem:[#allocation142_spill] sm:$0xff] %v2410_v38  ;;  %v2444_v38 = vld [vmem:[#allocation2 + $0x680] sm:$0xff]  ;;  %923 = vmatpush.msra.mxu3 %v2440_v41 }
  0xf8   : > { %3119 = vst [vmem:[#allocation143_spill] sm:$0xff] %v2414_v39  ;;  %v2446_v39 = vld [vmem:[#allocation2 + $0x688] sm:$0xff]  ;;  %864 = vmatpush.msra.mxu0 %v2444_v38 }
  0xf9   : > { %3120 = vst [vmem:[#allocation144_spill] sm:$0xff] %v2416_v35  ;;  %v2450_v35 = vld [vmem:[#allocation2 + $0x690] sm:$0xff]  ;;  %884 = vmatpush.msra.mxu1 %v2446_v39 }
  0xfa   : > { %3121 = vst [vmem:[#allocation145_spill] sm:$0xff] %v2420_v37  ;;  %v2452_v37 = vld [vmem:[#allocation2 + $0x698] sm:$0xff]  ;;  %904 = vmatpush.msra.mxu2 %v2450_v35 }
  0xfb   : > { %3122 = vst [vmem:[#allocation146_spill] sm:$0xff] %v2422_v34  ;;  %v2456_v34 = vld [vmem:[#allocation2 + $0x660] sm:$0xff]  ;;  %924 = vmatpush.msra.mxu3 %v2452_v37 }
  0xfc   : > { %3123 = vst [vmem:[#allocation147_spill] sm:$0xff] %v2426_v33  ;;  %v2458_v33 = vld [vmem:[#allocation2 + $0x668] sm:$0xff]  ;;  %865 = vmatpush.msra.mxu0 %v2456_v34 }
  0xfd   : > { %3124 = vst [vmem:[#allocation148_spill] sm:$0xff] %v2428_v40  ;;  %v2462_v40 = vld [vmem:[#allocation2 + $0x670] sm:$0xff]  ;;  %885 = vmatpush.msra.mxu1 %v2458_v33 }
  0xfe   : > { %3125 = vst [vmem:[#allocation149_spill] sm:$0xff] %v2432_v36  ;;  %v2464_v36 = vld [vmem:[#allocation2 + $0x678] sm:$0xff]  ;;  %905 = vmatpush.msra.mxu2 %v2462_v40 }
  0xff   : > { %3126 = vst [vmem:[#allocation150_spill] sm:$0xff] %v2434_v32  ;;  %v2468_v32 = vld [vmem:[#allocation2 + $0x640] sm:$0xff]  ;;  %925 = vmatpush.msra.mxu3 %v2464_v36 }
 0x100   : > { %3127 = vst [vmem:[#allocation151_spill] sm:$0xff] %v2438_v42  ;;  %v2470_v42 = vld [vmem:[#allocation2 + $0x648] sm:$0xff]  ;;  %866 = vmatpush.msra.mxu0 %v2468_v32 }
 0x101   : > { %3128 = vst [vmem:[#allocation152_spill] sm:$0xff] %v2440_v41  ;;  %v2474_v41 = vld [vmem:[#allocation2 + $0x650] sm:$0xff]  ;;  %886 = vmatpush.msra.mxu1 %v2470_v42 }
 0x102   : > { %3129 = vst [vmem:[#allocation153_spill] sm:$0xff] %v2444_v38  ;;  %v2476_v38 = vld [vmem:[#allocation2 + $0x658] sm:$0xff]  ;;  %906 = vmatpush.msra.mxu2 %v2474_v41 }
 0x103   : > { %3130 = vst [vmem:[#allocation154_spill] sm:$0xff] %v2446_v39  ;;  %v2480_v39 = vld [vmem:[#allocation2 + $0x620] sm:$0xff]  ;;  %926 = vmatpush.msra.mxu3 %v2476_v38 }
 0x104   : > { %3131 = vst [vmem:[#allocation155_spill] sm:$0xff] %v2450_v35  ;;  %v2482_v35 = vld [vmem:[#allocation2 + $0x628] sm:$0xff]  ;;  %867 = vmatpush.msra.mxu0 %v2480_v39 }
 0x105   : > { %3132 = vst [vmem:[#allocation156_spill] sm:$0xff] %v2452_v37  ;;  %887 = vmatpush.msra.mxu1 %v2482_v35  ;;  %v606_v37 = vpop.f32.mrf.mxu3 }
 0x106   : > { %3133 = vst [vmem:[#allocation157_spill] sm:$0xff] %v2456_v34  ;;  %v2486_v34 = vld [vmem:[#allocation2 + $0x630] sm:$0xff] }
 0x107   : > { %3134 = vst [vmem:[#allocation158_spill] sm:$0xff] %v2458_v33  ;;  %v2488_v33 = vld [vmem:[#allocation2 + $0x638] sm:$0xff]  ;;  %907 = vmatpush.msra.mxu2 %v2486_v34 }
 0x108   : > { %3135 = vst [vmem:[#allocation159_spill] sm:$0xff] %v2462_v40  ;;  %v2492_v40 = vld [vmem:[#allocation2 + $0x600] sm:$0xff]  ;;  %927 = vmatpush.msra.mxu3 %v2488_v33 }
 0x109   : > { %3136 = vst [vmem:[#allocation160_spill] sm:$0xff] %v2464_v36  ;;  %v2494_v36 = vld [vmem:[#allocation2 + $0x608] sm:$0xff]  ;;  %868 = vmatpush.msra.mxu0 %v2492_v40 }
 0x10a   : > { %3137 = vst [vmem:[#allocation161_spill] sm:$0xff] %v2468_v32  ;;  %v2498_v32 = vld [vmem:[#allocation2 + $0x610] sm:$0xff]  ;;  %888 = vmatpush.msra.mxu1 %v2494_v36  ;;  %869 = vmatmul.f32.vlgmr.msra.gmra.mxu0 %v606_v37 }
 0x10b   : > { %3138 = vst [vmem:[#allocation162_spill] sm:$0xff] %v2470_v42  ;;  %v2500_v42 = vld [vmem:[#allocation2 + $0x618] sm:$0xff]  ;;  %908 = vmatpush.msra.mxu2 %v2498_v32  ;;  %889 = vmatmul.f32.vlgmr.msra.gmra.mxu1 %v606_v37 }
 0x10c   : > { %3139 = vst [vmem:[#allocation163_spill] sm:$0xff] %v2474_v41  ;;  %928 = vmatpush.msra.mxu3 %v2500_v42  ;;  %909 = vmatmul.f32.vlgmr.msra.gmra.mxu2 %v606_v37  ;;  %v1602_v41 = vld [vmem:[#allocation2 + $0x398] sm:$0xff] }
 0x10d   : > { %3140 = vst [vmem:[#allocation164_spill] sm:$0xff] %v2476_v38  ;;  %v950_v38 = vld [vmem:[%s1831_s14 + $0x4] sm:$0xf]  ;;  %929 = vmatmul.f32.vlgmr.msra.gmra.mxu3 %v606_v37  ;;  %s1675_s14 = scalar_lea.hbm %s2816_s4, 128 }
 0x10e   : > { %3141 = vst [vmem:[#allocation165_spill] sm:$0xff] %v2480_v39  ;;  %1500 = vmatpush.msk.msrb.mxu1 %vm516_vm0, %v950_v38  ;;  %1498 = vmatpush.msk.msrb.mxu0 %vm516_vm0, %v950_v38  ;;  %v1587_v37 = vld [vmem:[#allocation2 + $0x3c0] sm:$0xff]  ;;  %v1601_v39 = vld [vmem:[#allocation2 + $0x390] sm:$0xff]  ;;  %p1677_p6 = scmp.lt.s32.totalorder %s1675_s14, %s1671_s11 }
 0x10f   : > { %3142 = vst [vmem:[#allocation166_spill] sm:$0xff] %v2482_v35  ;;  %v510_v35 = vld [vmem:[%s2814_s2] sm:$0xff]  ;;  %1502 = vmatpush.msk.msrb.mxu2 %vm516_vm0, %v950_v38  ;;  %1504 = vmatpush.msk.msrb.mxu3 %vm516_vm0, %v950_v38  ;;  %v1593_v38 = vld [vmem:[#allocation2 + $0x3d0] sm:$0xff] }
 0x110   : > { %3143 = vst [vmem:[#allocation167_spill] sm:$0xff] %v2486_v34  ;;  %v1588_v34 = vld [vmem:[#allocation2 + $0x3c8] sm:$0xff]  ;;  %p1678_p7 = por %p1677_p6, %p1676_p5 }
 0x111   : > { %3144 = vst [vmem:[#allocation168_spill] sm:$0xff] %v2488_v33  ;;  %v1742_v33 = vmov 0  }
 0x112   : > { %3145 = vst [vmem:[#allocation169_spill] sm:$0xff] %v2492_v40  ;;  %1582 = vset.pattern.permute.xlu0 %v1742_v33  ;;  %v1586_v40 = vld [vmem:[#allocation2 + $0x3f8] sm:$0xff]  ;;  %v1589_v33 = vld [vmem:[%s2813_s1 + $0x8] sm:$0xff]  ;;  %p1679_p9 = pnand %p1678_p7, %p1674_p3 }
 0x113   : > { %3146 = vst [vmem:[#allocation170_spill] sm:$0xff] %v2494_v36  ;;  %939 = vperm.xlu0 %1582, %v510_v35   ;;  %v1585_v36 = vld [vmem:[#allocation2 + $0x3f0] sm:$0xff]  ;;  %1094 = vmatpush.msra.mxu3 %v1586_v40  ;;  %v1590_v35 = vld [vmem:[%s2813_s1] sm:$0xff] }
 0x114   : > { %3147 = vst [vmem:[#allocation171_spill] sm:$0xff] %v2498_v32  ;;  %v1584_v32 = vld [vmem:[#allocation2 + $0x3e8] sm:$0xff]  ;;  %1074 = vmatpush.msra.mxu2 %v1585_v36  ;;  %1501 = vmatmul.msk.f32.vlgmr.msrb.gmra.mxu1 %vm512_vm1, %v1589_v33  ;;  %v1592_v36 = vld [vmem:[%s2813_s1 + $0x18] sm:$0xff]  ;;  %v1595_v40 = vld [vmem:[#allocation2 + $0x3a0] sm:$0xff] }
 0x115   : > { %3148 = vst [vmem:[#allocation172_spill] sm:$0xff] %v2500_v42  ;;  %v1583_v42 = vld [vmem:[#allocation2 + $0x3e0] sm:$0xff]  ;;  %1054 = vmatpush.msra.mxu1 %v1584_v32  ;;  %1499 = vmatmul.msk.f32.vlgmr.msrb.gmra.mxu0 %vm512_vm1, %v1590_v35  ;;  %v1591_v32 = vld [vmem:[%s2813_s1 + $0x10] sm:$0xff]  ;;  %v1598_v33 = vld [vmem:[#allocation2 + $0x3b8] sm:$0xff] }
 0x116   : > { %1034 = vmatpush.msra.mxu0 %v1583_v42  ;;  %1503 = vmatmul.msk.f32.vlgmr.msrb.gmra.mxu2 %vm512_vm1, %v1591_v32  ;;  %v1594_v42 = vld [vmem:[#allocation2 + $0x3d8] sm:$0xff]  ;;  %v1599_v35 = vld [vmem:[#allocation2 + $0x380] sm:$0xff]  ;;  %v1600_v32 = vld [vmem:[#allocation2 + $0x388] sm:$0xff] }
 0x117   : > { %1055 = vmatpush.msra.mxu1 %v1588_v34  ;;  %1505 = vmatmul.msk.f32.vlgmr.msrb.gmra.mxu3 %vm512_vm1, %v1592_v36  ;;  %v1596_v34 = vld [vmem:[#allocation2 + $0x3a8] sm:$0xff]  ;;  %v1603_v36 = vld [vmem:[#allocation2 + $0x360] sm:$0xff] }
 0x118   : > { %1035 = vmatpush.msra.mxu0 %v1587_v37  ;;  %1075 = vmatpush.msra.mxu2 %v1593_v38  ;;  %v1597_v37 = vld [vmem:[#allocation2 + $0x3b0] sm:$0xff]  ;;  %v1604_v38 = vld [vmem:[#allocation2 + $0x368] sm:$0xff] }
 0x119   : > { %1095 = vmatpush.msra.mxu3 %v1594_v42  ;;  %1056 = vmatpush.msra.mxu1 %v1596_v34  ;;  %v1605_v42 = vld [vmem:[#allocation2 + $0x370] sm:$0xff]  ;;  %v1607_v34 = vld [vmem:[#allocation2 + $0x340] sm:$0xff] }
 0x11a   : > { %1036 = vmatpush.msra.mxu0 %v1595_v40  ;;  %1076 = vmatpush.msra.mxu2 %v1597_v37  ;;  %v1606_v40 = vld [vmem:[#allocation2 + $0x378] sm:$0xff]  ;;  %v1608_v37 = vld [vmem:[#allocation2 + $0x348] sm:$0xff] }
 0x11b   : > { %1096 = vmatpush.msra.mxu3 %v1598_v33  ;;  %1057 = vmatpush.msra.mxu1 %v1600_v32  ;;  %v1609_v33 = vld [vmem:[#allocation2 + $0x350] sm:$0xff]  ;;  %v1611_v32 = vld [vmem:[#allocation2 + $0x320] sm:$0xff] }
 0x11c   : > { %1037 = vmatpush.msra.mxu0 %v1599_v35  ;;  %1077 = vmatpush.msra.mxu2 %v1601_v39  ;;  %v1610_v35 = vld [vmem:[#allocation2 + $0x358] sm:$0xff]  ;;  %v1612_v39 = vld [vmem:[#allocation2 + $0x328] sm:$0xff] }
 0x11d   : > { %1097 = vmatpush.msra.mxu3 %v1602_v41  ;;  %1058 = vmatpush.msra.mxu1 %v1604_v38  ;;  %v1613_v41 = vld [vmem:[#allocation2 + $0x330] sm:$0xff]  ;;  %v1615_v38 = vld [vmem:[#allocation2 + $0x300] sm:$0xff] }
 0x11e   : > { %1038 = vmatpush.msra.mxu0 %v1603_v36  ;;  %1078 = vmatpush.msra.mxu2 %v1605_v42  ;;  %v1614_v36 = vld [vmem:[#allocation2 + $0x338] sm:$0xff]  ;;  %v1616_v42 = vld [vmem:[#allocation2 + $0x308] sm:$0xff] }
 0x11f   : > { %1098 = vmatpush.msra.mxu3 %v1606_v40  ;;  %1059 = vmatpush.msra.mxu1 %v1608_v37  ;;  %v1617_v40 = vld [vmem:[#allocation2 + $0x310] sm:$0xff]  ;;  %v1619_v37 = vld [vmem:[#allocation2 + $0x2e0] sm:$0xff] }
 0x120   : > { %1039 = vmatpush.msra.mxu0 %v1607_v34  ;;  %1079 = vmatpush.msra.mxu2 %v1609_v33  ;;  %v1618_v34 = vld [vmem:[#allocation2 + $0x318] sm:$0xff]  ;;  %v1620_v33 = vld [vmem:[#allocation2 + $0x2e8] sm:$0xff] }
 0x121   : > { %1099 = vmatpush.msra.mxu3 %v1610_v35  ;;  %1060 = vmatpush.msra.mxu1 %v1612_v39  ;;  %v1621_v35 = vld [vmem:[#allocation2 + $0x2f0] sm:$0xff]  ;;  %v1623_v39 = vld [vmem:[#allocation2 + $0x2c0] sm:$0xff] }
 0x122   : > { %1040 = vmatpush.msra.mxu0 %v1611_v32  ;;  %1080 = vmatpush.msra.mxu2 %v1613_v41  ;;  %v1622_v32 = vld [vmem:[#allocation2 + $0x2f8] sm:$0xff]  ;;  %v1624_v41 = vld [vmem:[#allocation2 + $0x2c8] sm:$0xff] }
 0x123   : > { %1100 = vmatpush.msra.mxu3 %v1614_v36  ;;  %1061 = vmatpush.msra.mxu1 %v1616_v42 }
 0x124   : > { %1041 = vmatpush.msra.mxu0 %v1615_v38  ;;  %1081 = vmatpush.msra.mxu2 %v1617_v40 }
 0x125   : > { %1101 = vmatpush.msra.mxu3 %v1618_v34  ;;  %1062 = vmatpush.msra.mxu1 %v1620_v33 }
 0x126   : > { %1042 = vmatpush.msra.mxu0 %v1619_v37  ;;  %1082 = vmatpush.msra.mxu2 %v1621_v35 }
 0x127   : > { %1102 = vmatpush.msra.mxu3 %v1622_v32  ;;  %1063 = vmatpush.msra.mxu1 %v1624_v41 }
 0x128   : > { %1043 = vmatpush.msra.mxu0 %v1623_v39  ;;  %1083 = vmatpush.msra.mxu2 %v1854_v43  ;;  %v3149_v43 = vld [vmem:[#allocation8_spill] sm:$0xff] }
 0x129   : > { %1103 = vmatpush.msra.mxu3 %v1856_v44  ;;  %1064 = vmatpush.msra.mxu1 %v1860_v46  ;;  %v3150_v44 = vld [vmem:[#allocation9_spill] sm:$0xff]  ;;  %v3152_v46 = vld [vmem:[#allocation11_spill] sm:$0xff] }
 0x12a   : > { %1044 = vmatpush.msra.mxu0 %v1858_v45  ;;  %1084 = vmatpush.msra.mxu2 %v1862_v47  ;;  %v3151_v45 = vld [vmem:[#allocation10_spill] sm:$0xff]  ;;  %v3153_v47 = vld [vmem:[#allocation12_spill] sm:$0xff] }
 0x12b   : > { %1104 = vmatpush.msra.mxu3 %v1864_v48  ;;  %1065 = vmatpush.msra.mxu1 %v1870_v50  ;;  %v3154_v48 = vld [vmem:[#allocation13_spill] sm:$0xff]  ;;  %v3156_v50 = vld [vmem:[#allocation15_spill] sm:$0xff] }
 0x12c   : > { %1045 = vmatpush.msra.mxu0 %v1868_v49  ;;  %1085 = vmatpush.msra.mxu2 %v1874_v51  ;;  %v3155_v49 = vld [vmem:[#allocation14_spill] sm:$0xff]  ;;  %v3157_v51 = vld [vmem:[#allocation16_spill] sm:$0xff] }
 0x12d   : > { %1105 = vmatpush.msra.mxu3 %v1876_v52  ;;  %1066 = vmatpush.msra.mxu1 %v1882_v54  ;;  %v3158_v52 = vld [vmem:[#allocation17_spill] sm:$0xff]  ;;  %v3160_v54 = vld [vmem:[#allocation19_spill] sm:$0xff] }
 0x12e   : > { %1046 = vmatpush.msra.mxu0 %v1880_v53  ;;  %1086 = vmatpush.msra.mxu2 %v1886_v55  ;;  %v3159_v53 = vld [vmem:[#allocation18_spill] sm:$0xff]  ;;  %v3161_v55 = vld [vmem:[#allocation20_spill] sm:$0xff] }
 0x12f   : > { %1106 = vmatpush.msra.mxu3 %v1888_v56  ;;  %1067 = vmatpush.msra.mxu1 %v1894_v58  ;;  %v3162_v56 = vld [vmem:[#allocation21_spill] sm:$0xff]  ;;  %v3164_v58 = vld [vmem:[#allocation23_spill] sm:$0xff] }
 0x130   : > { %1047 = vmatpush.msra.mxu0 %v1892_v57  ;;  %1087 = vmatpush.msra.mxu2 %v1898_v59  ;;  %v3163_v57 = vld [vmem:[#allocation22_spill] sm:$0xff]  ;;  %v3165_v59 = vld [vmem:[#allocation24_spill] sm:$0xff] }
 0x131   : > { %1107 = vmatpush.msra.mxu3 %v1900_v60  ;;  %1068 = vmatpush.msra.mxu1 %v1906_v62  ;;  %v3166_v60 = vld [vmem:[#allocation25_spill] sm:$0xff]  ;;  %v3168_v62 = vld [vmem:[#allocation27_spill] sm:$0xff] }
 0x132   : > { %1048 = vmatpush.msra.mxu0 %v1904_v61  ;;  %1088 = vmatpush.msra.mxu2 %v1910_v63  ;;  %v3167_v61 = vld [vmem:[#allocation26_spill] sm:$0xff]  ;;  %v3169_v63 = vld [vmem:[#allocation28_spill] sm:$0xff] }
 0x133   : > { %1108 = vmatpush.msra.mxu3 %v1912_v0  ;;  %1069 = vmatpush.msra.mxu1 %v1918_v2  ;;  %v3170_v0 = vld [vmem:[#allocation29_spill] sm:$0xff]  ;;  %v3172_v2 = vld [vmem:[#allocation31_spill] sm:$0xff] }
 0x134   : > { %1049 = vmatpush.msra.mxu0 %v1916_v1  ;;  %1089 = vmatpush.msra.mxu2 %v1922_v3  ;;  %v3171_v1 = vld [vmem:[#allocation30_spill] sm:$0xff]  ;;  %v3173_v3 = vld [vmem:[#allocation32_spill] sm:$0xff] }
 0x135   : > { %1109 = vmatpush.msra.mxu3 %v1924_v4  ;;  %1134 = vmatpush.msrb.mxu1 %v1930_v6  ;;  %v3174_v4 = vld [vmem:[#allocation33_spill] sm:$0xff]  ;;  %v3176_v6 = vld [vmem:[#allocation35_spill] sm:$0xff] }
 0x136   : > { %1114 = vmatpush.msrb.mxu0 %v1928_v5  ;;  %1154 = vmatpush.msrb.mxu2 %v1934_v7  ;;  %v3175_v5 = vld [vmem:[#allocation34_spill] sm:$0xff]  ;;  %v3177_v7 = vld [vmem:[#allocation36_spill] sm:$0xff] }
 0x137   : > { %1174 = vmatpush.msrb.mxu3 %v1936_v8  ;;  %1135 = vmatpush.msrb.mxu1 %v1942_v10  ;;  %v3178_v8 = vld [vmem:[#allocation37_spill] sm:$0xff]  ;;  %v3180_v10 = vld [vmem:[#allocation39_spill] sm:$0xff] }
 0x138   : > { %1115 = vmatpush.msrb.mxu0 %v1940_v9  ;;  %1155 = vmatpush.msrb.mxu2 %v1946_v11  ;;  %v3179_v9 = vld [vmem:[#allocation38_spill] sm:$0xff]  ;;  %v3181_v11 = vld [vmem:[#allocation40_spill] sm:$0xff] }
 0x139   : > { %1175 = vmatpush.msrb.mxu3 %v1948_v12  ;;  %1136 = vmatpush.msrb.mxu1 %v1954_v14  ;;  %v3182_v12 = vld [vmem:[#allocation41_spill] sm:$0xff]  ;;  %v3184_v14 = vld [vmem:[#allocation43_spill] sm:$0xff] }
 0x13a   : > { %1116 = vmatpush.msrb.mxu0 %v1952_v13  ;;  %1156 = vmatpush.msrb.mxu2 %v1958_v15  ;;  %v3183_v13 = vld [vmem:[#allocation42_spill] sm:$0xff]  ;;  %v3185_v15 = vld [vmem:[#allocation44_spill] sm:$0xff] }
 0x13b   : > { %1176 = vmatpush.msrb.mxu3 %v1960_v16  ;;  %1137 = vmatpush.msrb.mxu1 %v1966_v18  ;;  %v626_v16 = vpop.f32.mrf.mxu0  ;;  %v666_v18 = vpop.f32.mrf.mxu2 }
 0x13c   : > { %1117 = vmatpush.msrb.mxu0 %v1964_v17  ;;  %1157 = vmatpush.msrb.mxu2 %v1970_v19  ;;  %v646_v17 = vpop.f32.mrf.mxu1  ;;  %v686_v19 = vpop.f32.mrf.mxu3 }
 0x13d   : > { %1177 = vmatpush.msrb.mxu3 %v1972_v20  ;;  %1138 = vmatpush.msrb.mxu1 %v1978_v22 }
 0x13e   : > { %1118 = vmatpush.msrb.mxu0 %v1976_v21  ;;  %1158 = vmatpush.msrb.mxu2 %v1982_v23 }
 0x13f   : > { %1178 = vmatpush.msrb.mxu3 %v1984_v24  ;;  %1139 = vmatpush.msrb.mxu1 %v1990_v26 }
 0x140   : > { %1119 = vmatpush.msrb.mxu0 %v1988_v25  ;;  %1159 = vmatpush.msrb.mxu2 %v1994_v27 }
 0x141   : > { %1179 = vmatpush.msrb.mxu3 %v1996_v28  ;;  %1140 = vmatpush.msrb.mxu1 %v2002_v30 }
 0x142   : > { %1120 = vmatpush.msrb.mxu0 %v2000_v29  ;;  %1160 = vmatpush.msrb.mxu2 %v2006_v31 }
 0x143   : > { %1180 = vmatpush.msrb.mxu3 %v3149_v43  ;;  %1141 = vmatpush.msrb.mxu1 %v3151_v45  ;;  %v706_v20 = vpop.f32.mrf.mxu0  ;;  %v746_v22 = vpop.f32.mrf.mxu2 }
 0x144   : > { %1121 = vmatpush.msrb.mxu0 %v3150_v44  ;;  %1161 = vmatpush.msrb.mxu2 %v3152_v46  ;;  %v726_v21 = vpop.f32.mrf.mxu1  ;;  %v766_v23 = vpop.f32.mrf.mxu3  ;;  %v707_v26 = vadd.f32 %v706_v20, %v626_v16  ;;  %v747_v35 = vadd.f32 %v746_v22, %v666_v18  ;;  %v3215_v16 = vld [vmem:[#allocation74_spill] sm:$0xff]  ;;  %v3217_v18 = vld [vmem:[#allocation76_spill] sm:$0xff] }
 0x145   : > { %1181 = vmatpush.msrb.mxu3 %v3153_v47  ;;  %1142 = vmatpush.msrb.mxu1 %v3155_v49  ;;  %v727_v27 = vadd.f32 %v726_v21, %v646_v17  ;;  %v767_v32 = vadd.f32 %v766_v23, %v686_v19  ;;  %v3216_v17 = vld [vmem:[#allocation75_spill] sm:$0xff]  ;;  %v3218_v19 = vld [vmem:[#allocation77_spill] sm:$0xff]  ;;  %v3219_v20 = vld [vmem:[#allocation78_spill] sm:$0xff] }
 0x146   : > { %1122 = vmatpush.msrb.mxu0 %v3154_v48  ;;  %1162 = vmatpush.msrb.mxu2 %v3156_v50  ;;  %v3186_v50 = vld [vmem:[#allocation45_spill] sm:$0xff]  ;;  %v3220_v21 = vld [vmem:[#allocation79_spill] sm:$0xff]  ;;  %v3221_v22 = vld [vmem:[#allocation80_spill] sm:$0xff] }
 0x147   : > { %1182 = vmatpush.msrb.mxu3 %v3157_v51  ;;  %1143 = vmatpush.msrb.mxu1 %v3159_v53  ;;  %v3187_v51 = vld [vmem:[#allocation46_spill] sm:$0xff]  ;;  %v3189_v53 = vld [vmem:[#allocation48_spill] sm:$0xff]  ;;  %v3222_v23 = vld [vmem:[#allocation81_spill] sm:$0xff] }
 0x148   : > { %1123 = vmatpush.msrb.mxu0 %v3158_v52  ;;  %1163 = vmatpush.msrb.mxu2 %v3160_v54  ;;  %v3188_v52 = vld [vmem:[#allocation47_spill] sm:$0xff]  ;;  %v3190_v54 = vld [vmem:[#allocation49_spill] sm:$0xff] }
 0x149   : > { %1183 = vmatpush.msrb.mxu3 %v3161_v55  ;;  %1144 = vmatpush.msrb.mxu1 %v3163_v57  ;;  %v3191_v55 = vld [vmem:[#allocation50_spill] sm:$0xff]  ;;  %v3193_v57 = vld [vmem:[#allocation52_spill] sm:$0xff] }
 0x14a   : > { %1124 = vmatpush.msrb.mxu0 %v3162_v56  ;;  %1164 = vmatpush.msrb.mxu2 %v3164_v58  ;;  %v3192_v56 = vld [vmem:[#allocation51_spill] sm:$0xff]  ;;  %v3194_v58 = vld [vmem:[#allocation53_spill] sm:$0xff] }
 0x14b   : > { %1184 = vmatpush.msrb.mxu3 %v3165_v59  ;;  %1145 = vmatpush.msrb.mxu1 %v3167_v61  ;;  %v786_v24 = vpop.f32.mrf.mxu0  ;;  %v3195_v59 = vld [vmem:[#allocation54_spill] sm:$0xff]  ;;  %v3197_v61 = vld [vmem:[#allocation56_spill] sm:$0xff] }
 0x14c   : > { %1125 = vmatpush.msrb.mxu0 %v3166_v60  ;;  %1165 = vmatpush.msrb.mxu2 %v3168_v62  ;;  %v806_v25 = vpop.f32.mrf.mxu1  ;;  %v849_v29 = vadd.f32 %v786_v24, %v707_v26  ;;  %v3196_v60 = vld [vmem:[#allocation55_spill] sm:$0xff]  ;;  %v3223_v24 = vld [vmem:[#allocation82_spill] sm:$0xff]  ;;  %v3225_v26 = vld [vmem:[#allocation84_spill] sm:$0xff] }
 0x14d   : > { %1185 = vmatpush.msrb.mxu3 %v3169_v63  ;;  %1146 = vmatpush.msrb.mxu1 %v3171_v1  ;;  %v850_v30 = vadd.f32 %v806_v25, %v727_v27  ;;  %v3198_v63 = vld [vmem:[#allocation57_spill] sm:$0xff]  ;;  %v3200_v1 = vld [vmem:[#allocation59_spill] sm:$0xff] }
 0x14e   : > { %1126 = vmatpush.msrb.mxu0 %v3170_v0  ;;  %1166 = vmatpush.msrb.mxu2 %v3172_v2  ;;  %v3199_v0 = vld [vmem:[#allocation58_spill] sm:$0xff]  ;;  %v3201_v2 = vld [vmem:[#allocation60_spill] sm:$0xff]  ;;  %v3224_v25 = vld [vmem:[#allocation83_spill] sm:$0xff] }
 0x14f   : > { %1186 = vmatpush.msrb.mxu3 %v3173_v3  ;;  %1147 = vmatpush.msrb.mxu1 %v3175_v5  ;;  %v3202_v3 = vld [vmem:[#allocation61_spill] sm:$0xff]  ;;  %v3204_v5 = vld [vmem:[#allocation63_spill] sm:$0xff] }
 0x150   : > { %1127 = vmatpush.msrb.mxu0 %v3174_v4  ;;  %1167 = vmatpush.msrb.mxu2 %v3176_v6  ;;  %v826_v28 = vpop.f32.mrf.mxu2  ;;  %v846_v31 = vpop.f32.mrf.mxu3  ;;  %v3203_v4 = vld [vmem:[#allocation62_spill] sm:$0xff]  ;;  %v3205_v6 = vld [vmem:[#allocation64_spill] sm:$0xff]  ;;  %v3226_v27 = vld [vmem:[#allocation85_spill] sm:$0xff] }
 0x151   : > { %1187 = vmatpush.msrb.mxu3 %v3177_v7  ;;  %1148 = vmatpush.msrb.mxu1 %v3179_v9  ;;  %v851_v39 = vadd.f32 %v826_v28, %v747_v35  ;;  %v852_v41 = vadd.f32 %v846_v31, %v767_v32  ;;  %v3206_v7 = vld [vmem:[#allocation65_spill] sm:$0xff]  ;;  %v3208_v9 = vld [vmem:[#allocation67_spill] sm:$0xff]  ;;  %v3227_v28 = vld [vmem:[#allocation86_spill] sm:$0xff] }
 0x152   : > { %1128 = vmatpush.msrb.mxu0 %v3178_v8  ;;  %1168 = vmatpush.msrb.mxu2 %v3180_v10  ;;  %v3207_v8 = vld [vmem:[#allocation66_spill] sm:$0xff]  ;;  %v3209_v10 = vld [vmem:[#allocation68_spill] sm:$0xff]  ;;  %v3230_v31 = vld [vmem:[#allocation89_spill] sm:$0xff] }
 0x153   : > { %1188 = vmatpush.msrb.mxu3 %v3181_v11  ;;  %1149 = vmatpush.msrb.mxu1 %v3183_v13  ;;  %v3210_v11 = vld [vmem:[#allocation69_spill] sm:$0xff]  ;;  %v3212_v13 = vld [vmem:[#allocation71_spill] sm:$0xff]  ;;  %v3237_v35 = vld [vmem:[#allocation96_spill] sm:$0xff] }
 0x154   : > { %1129 = vmatpush.msrb.mxu0 %v3182_v12  ;;  %1169 = vmatpush.msrb.mxu2 %v3184_v14  ;;  %v3211_v12 = vld [vmem:[#allocation70_spill] sm:$0xff]  ;;  %v3213_v14 = vld [vmem:[#allocation72_spill] sm:$0xff]  ;;  %v3238_v32 = vld [vmem:[#allocation97_spill] sm:$0xff] }
 0x155   : > { %1189 = vmatpush.msrb.mxu3 %v3185_v15  ;;  %v3214_v15 = vld [vmem:[#allocation73_spill] sm:$0xff] }
 0x185   : > { %v2625_v36 = vpop.permute.xlu0 %939 }
 0x187   : > { %v870_v38 = vpop.f32.mrf.mxu0 }
 0x188   : > { %v890_v42 = vpop.f32.mrf.mxu1  ;;  %v933_v40 = vadd.f32 %v870_v38, %v849_v29  ;;  %v3228_v29 = vld [vmem:[#allocation87_spill] sm:$0xff]  ;;  %v3231_v38 = vld [vmem:[#allocation90_spill] sm:$0xff] }
 0x189   : > { %v934_v34 = vadd.f32 %v890_v42, %v850_v30  ;;  %v3229_v30 = vld [vmem:[#allocation88_spill] sm:$0xff]  ;;  %v3232_v42 = vld [vmem:[#allocation91_spill] sm:$0xff] }
 0x18a   : > { %v942_v37 = vadd.f32 %v2625_v36, %v933_v40  ;;  %v3233_v40 = vld [vmem:[#allocation92_spill] sm:$0xff] }
 0x18b   : > { %v943_v33 = vadd.f32 %v2625_v36, %v934_v34  ;;  %v3234_v34 = vld [vmem:[#allocation93_spill] sm:$0xff] }
 0x18c   : > { %946 = vst [vmem:[%s2629_s29] sm:$0xff] %v942_v37  ;;  %v3235_v37 = vld [vmem:[#allocation94_spill] sm:$0xff] }
 0x18d   : > { %947 = vst [vmem:[%s2629_s29 + $0x8] sm:$0xff] %v943_v33  ;;  %v3236_v33 = vld [vmem:[#allocation95_spill] sm:$0xff] }
 0x18f   : > { %v910_v43 = vpop.f32.mrf.mxu2 }
 0x190   : > { %v930_v44 = vpop.f32.mrf.mxu3  ;;  %v935_v45 = vadd.f32 %v910_v43, %v851_v39  ;;  %v3239_v39 = vld [vmem:[#allocation98_spill] sm:$0xff]  ;;  %v3241_v43 = vld [vmem:[#allocation100_spill] sm:$0xff] }
 0x191   : > { %v936_v46 = vadd.f32 %v930_v44, %v852_v41  ;;  %v991_v47 = vpop.f32.mrf.mxu1  ;;  %v3240_v41 = vld [vmem:[#allocation99_spill] sm:$0xff]  ;;  %v3242_v44 = vld [vmem:[#allocation101_spill] sm:$0xff] }
 0x192   : > { %1050 = vmatmul.f32.vlgmr.msra.gmra.mxu0 %v991_v47  ;;  %1070 = vmatmul.f32.vlgmr.msra.gmra.mxu1 %v991_v47  ;;  %v944_v48 = vadd.f32 %v2625_v36, %v935_v45  ;;  %v971_v62 = vpop.f32.mrf.mxu0  ;;  %v3243_v45 = vld [vmem:[#allocation102_spill] sm:$0xff] }
 0x193   : > { %v945_v49 = vadd.f32 %v2625_v36, %v936_v46  ;;  %1090 = vmatmul.f32.vlgmr.msra.gmra.mxu2 %v991_v47  ;;  %1110 = vmatmul.f32.vlgmr.msra.gmra.mxu3 %v991_v47  ;;  %v3244_v46 = vld [vmem:[#allocation103_spill] sm:$0xff]  ;;  %v3245_v47 = vld [vmem:[#allocation104_spill] sm:$0xff] }
 0x194   : > { %1194 = vmatpush.msra.mxu0 %v3186_v50  ;;  %1214 = vmatpush.msra.mxu1 %v3187_v51  ;;  %948 = vst [vmem:[%s2629_s29 + $0x10] sm:$0xff] %v944_v48  ;;  %v3247_v50 = vld [vmem:[#allocation106_spill] sm:$0xff]  ;;  %v3248_v51 = vld [vmem:[#allocation107_spill] sm:$0xff] }
 0x195   : > { %1234 = vmatpush.msra.mxu2 %v3188_v52  ;;  %1254 = vmatpush.msra.mxu3 %v3189_v53  ;;  %949 = vst [vmem:[%s2629_s29 + $0x18] sm:$0xff] %v945_v49  ;;  %v3246_v49 = vld [vmem:[#allocation105_spill] sm:$0xff]  ;;  %v3249_v52 = vld [vmem:[#allocation108_spill] sm:$0xff] }
 0x196   : > { %1195 = vmatpush.msra.mxu0 %v3190_v54  ;;  %1215 = vmatpush.msra.mxu1 %v3191_v55  ;;  %v3250_v53 = vld [vmem:[#allocation109_spill] sm:$0xff]  ;;  %v3251_v54 = vld [vmem:[#allocation110_spill] sm:$0xff]  ;;  %v3252_v55 = vld [vmem:[#allocation111_spill] sm:$0xff] }
 0x197   : > { %1235 = vmatpush.msra.mxu2 %v3192_v56  ;;  %1255 = vmatpush.msra.mxu3 %v3193_v57  ;;  %v3253_v56 = vld [vmem:[#allocation112_spill] sm:$0xff]  ;;  %v3254_v57 = vld [vmem:[#allocation113_spill] sm:$0xff] }
 0x198   : > { %1196 = vmatpush.msra.mxu0 %v3194_v58  ;;  %1216 = vmatpush.msra.mxu1 %v3195_v59  ;;  %v3255_v58 = vld [vmem:[#allocation114_spill] sm:$0xff]  ;;  %v3256_v59 = vld [vmem:[#allocation115_spill] sm:$0xff] }
 0x199   : > { %1236 = vmatpush.msra.mxu2 %v3196_v60  ;;  %1256 = vmatpush.msra.mxu3 %v3197_v61  ;;  %v1011_v48 = vpop.f32.mrf.mxu2  ;;  %v3257_v60 = vld [vmem:[#allocation116_spill] sm:$0xff]  ;;  %v3258_v61 = vld [vmem:[#allocation117_spill] sm:$0xff] }
 0x19a   : > { %1197 = vmatpush.msra.mxu0 %v3198_v63  ;;  %1217 = vmatpush.msra.mxu1 %v3199_v0  ;;  %v3260_v63 = vld [vmem:[#allocation119_spill] sm:$0xff]  ;;  %v3261_v0 = vld [vmem:[#allocation120_spill] sm:$0xff] }
 0x19b   : > { %1237 = vmatpush.msra.mxu2 %v3200_v1  ;;  %1257 = vmatpush.msra.mxu3 %v3201_v2  ;;  %v3262_v1 = vld [vmem:[#allocation121_spill] sm:$0xff]  ;;  %v3263_v2 = vld [vmem:[#allocation122_spill] sm:$0xff] }
 0x19c   : > { %1130 = vmatmul.f32.vlgmr.msrb.gmra.mxu0 %v971_v62  ;;  %1150 = vmatmul.f32.vlgmr.msrb.gmra.mxu1 %v971_v62 }
 0x19d   : > { %1170 = vmatmul.f32.vlgmr.msrb.gmra.mxu2 %v971_v62  ;;  %1190 = vmatmul.f32.vlgmr.msrb.gmra.mxu3 %v971_v62  ;;  %v3259_v62 = vld [vmem:[#allocation118_spill] sm:$0xff] }
 0x19e   : > { %1198 = vmatpush.msra.mxu0 %v3202_v3  ;;  %1218 = vmatpush.msra.mxu1 %v3203_v4  ;;  %v3264_v3 = vld [vmem:[#allocation123_spill] sm:$0xff]  ;;  %v3265_v4 = vld [vmem:[#allocation124_spill] sm:$0xff] }
 0x19f   : > { %1238 = vmatpush.msra.mxu2 %v3204_v5  ;;  %1258 = vmatpush.msra.mxu3 %v3205_v6  ;;  %v3266_v5 = vld [vmem:[#allocation125_spill] sm:$0xff]  ;;  %v3267_v6 = vld [vmem:[#allocation126_spill] sm:$0xff] }
 0x1a0   : > { %1199 = vmatpush.msra.mxu0 %v3206_v7  ;;  %1219 = vmatpush.msra.mxu1 %v3207_v8  ;;  %v3268_v7 = vld [vmem:[#allocation127_spill] sm:$0xff]  ;;  %v3269_v8 = vld [vmem:[#allocation128_spill] sm:$0xff] }
 0x1a1   : > { %1239 = vmatpush.msra.mxu2 %v3208_v9  ;;  %1259 = vmatpush.msra.mxu3 %v3209_v10  ;;  %v3270_v9 = vld [vmem:[#allocation129_spill] sm:$0xff]  ;;  %v3271_v10 = vld [vmem:[#allocation130_spill] sm:$0xff] }
 0x1a2   : > { %1200 = vmatpush.msra.mxu0 %v3210_v11  ;;  %1220 = vmatpush.msra.mxu1 %v3211_v12  ;;  %v3272_v11 = vld [vmem:[#allocation131_spill] sm:$0xff]  ;;  %v3273_v12 = vld [vmem:[#allocation132_spill] sm:$0xff] }
 0x1a3   : > { %1240 = vmatpush.msra.mxu2 %v3212_v13  ;;  %1260 = vmatpush.msra.mxu3 %v3213_v14  ;;  %v3274_v13 = vld [vmem:[#allocation133_spill] sm:$0xff]  ;;  %v3275_v14 = vld [vmem:[#allocation134_spill] sm:$0xff] }
 0x1a4   : > { %1201 = vmatpush.msra.mxu0 %v3214_v15  ;;  %1221 = vmatpush.msra.mxu1 %v3215_v16  ;;  %v3276_v15 = vld [vmem:[#allocation135_spill] sm:$0xff]  ;;  %v3277_v16 = vld [vmem:[#allocation136_spill] sm:$0xff] }
 0x1a5   : > { %1241 = vmatpush.msra.mxu2 %v3216_v17  ;;  %1261 = vmatpush.msra.mxu3 %v3217_v18  ;;  %v3278_v17 = vld [vmem:[#allocation137_spill] sm:$0xff]  ;;  %v3279_v18 = vld [vmem:[#allocation138_spill] sm:$0xff] }
 0x1a6   : > { %1202 = vmatpush.msra.mxu0 %v3218_v19  ;;  %1222 = vmatpush.msra.mxu1 %v3219_v20  ;;  %v3280_v19 = vld [vmem:[#allocation139_spill] sm:$0xff]  ;;  %v3281_v20 = vld [vmem:[#allocation140_spill] sm:$0xff] }
 0x1a7   : > { %1242 = vmatpush.msra.mxu2 %v3220_v21  ;;  %1262 = vmatpush.msra.mxu3 %v3221_v22  ;;  %v3282_v21 = vld [vmem:[#allocation141_spill] sm:$0xff]  ;;  %v3283_v22 = vld [vmem:[#allocation142_spill] sm:$0xff] }
 0x1a8   : > { %1203 = vmatpush.msra.mxu0 %v3222_v23  ;;  %1223 = vmatpush.msra.mxu1 %v3223_v24  ;;  %v3284_v23 = vld [vmem:[#allocation143_spill] sm:$0xff]  ;;  %v3285_v24 = vld [vmem:[#allocation144_spill] sm:$0xff] }
 0x1a9   : > { %1243 = vmatpush.msra.mxu2 %v3224_v25  ;;  %1263 = vmatpush.msra.mxu3 %v3225_v26  ;;  %v3286_v25 = vld [vmem:[#allocation145_spill] sm:$0xff]  ;;  %v3287_v26 = vld [vmem:[#allocation146_spill] sm:$0xff] }
 0x1aa   : > { %1204 = vmatpush.msra.mxu0 %v3226_v27  ;;  %1224 = vmatpush.msra.mxu1 %v3227_v28  ;;  %v3288_v27 = vld [vmem:[#allocation147_spill] sm:$0xff]  ;;  %v3289_v28 = vld [vmem:[#allocation148_spill] sm:$0xff] }
 0x1ab   : > { %1244 = vmatpush.msra.mxu2 %v3228_v29  ;;  %1264 = vmatpush.msra.mxu3 %v3229_v30  ;;  %v3290_v29 = vld [vmem:[#allocation149_spill] sm:$0xff]  ;;  %v3291_v30 = vld [vmem:[#allocation150_spill] sm:$0xff] }
 0x1ac   : > { %1205 = vmatpush.msra.mxu0 %v3230_v31  ;;  %1225 = vmatpush.msra.mxu1 %v3231_v38  ;;  %v3292_v31 = vld [vmem:[#allocation151_spill] sm:$0xff]  ;;  %v3293_v38 = vld [vmem:[#allocation152_spill] sm:$0xff] }
 0x1ad   : > { %1245 = vmatpush.msra.mxu2 %v3232_v42  ;;  %1265 = vmatpush.msra.mxu3 %v3233_v40  ;;  %v3294_v42 = vld [vmem:[#allocation153_spill] sm:$0xff]  ;;  %v3295_v40 = vld [vmem:[#allocation154_spill] sm:$0xff] }
 0x1ae   : > { %1206 = vmatpush.msra.mxu0 %v3234_v34  ;;  %1226 = vmatpush.msra.mxu1 %v3235_v37  ;;  %v3296_v34 = vld [vmem:[#allocation155_spill] sm:$0xff]  ;;  %v3297_v37 = vld [vmem:[#allocation156_spill] sm:$0xff] }
 0x1af   : > { %1246 = vmatpush.msra.mxu2 %v3236_v33  ;;  %1266 = vmatpush.msra.mxu3 %v3237_v35  ;;  %v3298_v33 = vld [vmem:[#allocation157_spill] sm:$0xff]  ;;  %v3299_v35 = vld [vmem:[#allocation158_spill] sm:$0xff] }
 0x1b0   : > { %1207 = vmatpush.msra.mxu0 %v3238_v32  ;;  %1227 = vmatpush.msra.mxu1 %v3239_v39  ;;  %v3300_v32 = vld [vmem:[#allocation159_spill] sm:$0xff]  ;;  %v3301_v39 = vld [vmem:[#allocation160_spill] sm:$0xff] }
 0x1b1   : > { %1247 = vmatpush.msra.mxu2 %v3240_v41  ;;  %1267 = vmatpush.msra.mxu3 %v3241_v43  ;;  %v3302_v41 = vld [vmem:[#allocation161_spill] sm:$0xff]  ;;  %v3303_v43 = vld [vmem:[#allocation162_spill] sm:$0xff] }
 0x1b2   : > { %1208 = vmatpush.msra.mxu0 %v3242_v44  ;;  %1228 = vmatpush.msra.mxu1 %v3243_v45  ;;  %v3304_v44 = vld [vmem:[#allocation163_spill] sm:$0xff]  ;;  %v3305_v45 = vld [vmem:[#allocation164_spill] sm:$0xff] }
 0x1b3   : > { %1248 = vmatpush.msra.mxu2 %v3244_v46  ;;  %1268 = vmatpush.msra.mxu3 %v3245_v47  ;;  %v3306_v46 = vld [vmem:[#allocation165_spill] sm:$0xff]  ;;  %v3307_v47 = vld [vmem:[#allocation166_spill] sm:$0xff] }
 0x1b4   : > { %1209 = vmatpush.msra.mxu0 %v3246_v49  ;;  %1229 = vmatpush.msra.mxu1 %v3247_v50  ;;  %v3309_v49 = vld [vmem:[#allocation168_spill] sm:$0xff]  ;;  %v1031_v50 = vpop.f32.mrf.mxu3 }
 0x1b5   : > { %1249 = vmatpush.msra.mxu2 %v3248_v51  ;;  %1269 = vmatpush.msra.mxu3 %v3249_v52  ;;  %v3310_v51 = vld [vmem:[#allocation169_spill] sm:$0xff]  ;;  %v3311_v52 = vld [vmem:[#allocation170_spill] sm:$0xff] }
 0x1b6   : > { %1210 = vmatmul.f32.vlgmr.msra.gmra.mxu0 %v1011_v48  ;;  %1230 = vmatmul.f32.vlgmr.msra.gmra.mxu1 %v1011_v48 }
 0x1b7   : > { %1250 = vmatmul.f32.vlgmr.msra.gmra.mxu2 %v1011_v48  ;;  %1270 = vmatmul.f32.vlgmr.msra.gmra.mxu3 %v1011_v48  ;;  %v3308_v48 = vld [vmem:[#allocation167_spill] sm:$0xff] }
 0x1b8   : > { %1278 = vmatpush.msrb.mxu0 %v3250_v53  ;;  %1298 = vmatpush.msrb.mxu1 %v3251_v54  ;;  %v3312_v53 = vld [vmem:[#allocation171_spill] sm:$0xff]  ;;  %v3313_v54 = vld [vmem:[#allocation172_spill] sm:$0xff] }
 0x1b9   : > { %1318 = vmatpush.msrb.mxu2 %v3252_v55  ;;  %1338 = vmatpush.msrb.mxu3 %v3253_v56 }
 0x1ba   : > { %1279 = vmatpush.msrb.mxu0 %v3254_v57  ;;  %1299 = vmatpush.msrb.mxu1 %v3255_v58 }
 0x1bb   : > { %1319 = vmatpush.msrb.mxu2 %v3256_v59  ;;  %1339 = vmatpush.msrb.mxu3 %v3257_v60 }
 0x1bc   : > { %1280 = vmatpush.msrb.mxu0 %v3258_v61  ;;  %1300 = vmatpush.msrb.mxu1 %v3259_v62 }
 0x1bd   : > { %1320 = vmatpush.msrb.mxu2 %v3260_v63  ;;  %1340 = vmatpush.msrb.mxu3 %v3261_v0 }
 0x1be   : > { %1281 = vmatpush.msrb.mxu0 %v3262_v1  ;;  %1301 = vmatpush.msrb.mxu1 %v3263_v2 }
 0x1bf   : > { %1321 = vmatpush.msrb.mxu2 %v3264_v3  ;;  %1341 = vmatpush.msrb.mxu3 %v3265_v4 }
 0x1c0   : > { %1282 = vmatpush.msrb.mxu0 %v3266_v5  ;;  %1302 = vmatpush.msrb.mxu1 %v3267_v6 }
 0x1c1   : > { %1322 = vmatpush.msrb.mxu2 %v3268_v7  ;;  %1342 = vmatpush.msrb.mxu3 %v3269_v8 }
 0x1c2   : > { %1283 = vmatpush.msrb.mxu0 %v3270_v9  ;;  %1303 = vmatpush.msrb.mxu1 %v3271_v10 }
 0x1c3   : > { %1323 = vmatpush.msrb.mxu2 %v3272_v11  ;;  %1343 = vmatpush.msrb.mxu3 %v3273_v12 }
 0x1c4   : > { %1284 = vmatpush.msrb.mxu0 %v3274_v13  ;;  %1304 = vmatpush.msrb.mxu1 %v3275_v14 }
 0x1c5   : > { %1324 = vmatpush.msrb.mxu2 %v3276_v15  ;;  %1344 = vmatpush.msrb.mxu3 %v3277_v16 }
 0x1c6   : > { %1285 = vmatpush.msrb.mxu0 %v3278_v17  ;;  %1305 = vmatpush.msrb.mxu1 %v3279_v18 }
 0x1c7   : > { %1325 = vmatpush.msrb.mxu2 %v3280_v19  ;;  %1345 = vmatpush.msrb.mxu3 %v3281_v20 }
 0x1c8   : > { %1286 = vmatpush.msrb.mxu0 %v3282_v21  ;;  %1306 = vmatpush.msrb.mxu1 %v3283_v22 }
 0x1c9   : > { %1326 = vmatpush.msrb.mxu2 %v3284_v23  ;;  %1346 = vmatpush.msrb.mxu3 %v3285_v24 }
 0x1ca   : > { %1287 = vmatpush.msrb.mxu0 %v3286_v25  ;;  %1307 = vmatpush.msrb.mxu1 %v3287_v26 }
 0x1cb   : > { %1327 = vmatpush.msrb.mxu2 %v3288_v27  ;;  %1347 = vmatpush.msrb.mxu3 %v3289_v28 }
 0x1cc   : > { %1288 = vmatpush.msrb.mxu0 %v3290_v29  ;;  %1308 = vmatpush.msrb.mxu1 %v3291_v30 }
 0x1cd   : > { %1328 = vmatpush.msrb.mxu2 %v3292_v31  ;;  %1348 = vmatpush.msrb.mxu3 %v3293_v38 }
 0x1ce   : > { %1289 = vmatpush.msrb.mxu0 %v3294_v42  ;;  %1309 = vmatpush.msrb.mxu1 %v3295_v40 }
 0x1cf   : > { %1329 = vmatpush.msrb.mxu2 %v3296_v34  ;;  %1349 = vmatpush.msrb.mxu3 %v3297_v37 }
 0x1d0   : > { %1290 = vmatpush.msrb.mxu0 %v3298_v33  ;;  %1310 = vmatpush.msrb.mxu1 %v3299_v35 }
 0x1d1   : > { %1330 = vmatpush.msrb.mxu2 %v3300_v32  ;;  %1350 = vmatpush.msrb.mxu3 %v3301_v39 }
 0x1d2   : > { %1291 = vmatpush.msrb.mxu0 %v3302_v41  ;;  %1311 = vmatpush.msrb.mxu1 %v3303_v43 }
 0x1d3   : > { %1331 = vmatpush.msrb.mxu2 %v3304_v44  ;;  %1351 = vmatpush.msrb.mxu3 %v3305_v45 }
 0x1d4   : > { %1292 = vmatpush.msrb.mxu0 %v3306_v46  ;;  %1312 = vmatpush.msrb.mxu1 %v3307_v47 }
 0x1d5   : > { %1332 = vmatpush.msrb.mxu2 %v3308_v48  ;;  %1352 = vmatpush.msrb.mxu3 %v3309_v49 }
 0x1d6   : > { %1293 = vmatpush.msrb.mxu0 %v3310_v51  ;;  %1313 = vmatpush.msrb.mxu1 %v3311_v52 }
 0x1d7   : > { %1333 = vmatpush.msrb.mxu2 %v3312_v53  ;;  %1353 = vmatpush.msrb.mxu3 %v3313_v54 }
 0x1d8   : > { %1294 = vmatmul.f32.vlgmr.msrb.gmra.mxu0 %v1031_v50  ;;  %1314 = vmatmul.f32.vlgmr.msrb.gmra.mxu1 %v1031_v50 }
 0x1d9   : > { %1334 = vmatmul.f32.vlgmr.msrb.gmra.mxu2 %v1031_v50  ;;  %1354 = vmatmul.f32.vlgmr.msrb.gmra.mxu3 %v1031_v50 }
 0x20f   : > { %v1051_v55 = vpop.f32.mrf.mxu0  ;;  %v1071_v56 = vpop.f32.mrf.mxu1 }
 0x216   : > { %v1091_v57 = vpop.f32.mrf.mxu2  ;;  %v1111_v58 = vpop.f32.mrf.mxu3 }
 0x219   : > { %v1131_v59 = vpop.f32.mrf.mxu0  ;;  %v1151_v60 = vpop.f32.mrf.mxu1 }
 0x21a   : > { %v1132_v1 = vadd.f32 %v1131_v59, %v1051_v55  ;;  %v1152_v2 = vadd.f32 %v1151_v60, %v1071_v56 }
 0x220   : > { %v1171_v61 = vpop.f32.mrf.mxu2  ;;  %v1191_v62 = vpop.f32.mrf.mxu3 }
 0x221   : > { %v1172_v13 = vadd.f32 %v1171_v61, %v1091_v57  ;;  %v1192_v14 = vadd.f32 %v1191_v62, %v1111_v58 }
 0x233   : > { %v1211_v63 = vpop.f32.mrf.mxu0  ;;  %v1231_v0 = vpop.f32.mrf.mxu1 }
 0x234   : > { %v1274_v3 = vadd.f32 %v1211_v63, %v1132_v1  ;;  %v1275_v4 = vadd.f32 %v1231_v0, %v1152_v2 }
 0x23a   : > { %v1251_v5 = vpop.f32.mrf.mxu2  ;;  %v1271_v6 = vpop.f32.mrf.mxu3 }
 0x23b   : > { %v1276_v15 = vadd.f32 %v1251_v5, %v1172_v13  ;;  %v1277_v16 = vadd.f32 %v1271_v6, %v1192_v14 }
 0x255   : > { %v1295_v7 = vpop.f32.mrf.mxu0  ;;  %v1315_v8 = vpop.f32.mrf.mxu1 }
 0x256   : > { %v1358_v9 = vadd.f32 %v1295_v7, %v1274_v3  ;;  %v1359_v10 = vadd.f32 %v1315_v8, %v1275_v4 }
 0x258   : > { %v1362_v11 = vadd.f32 %v1358_v9, %v2625_v36  ;;  %v1363_v12 = vadd.f32 %v1359_v10, %v2625_v36 }
 0x25a   : > { %1366 = vst [vmem:[%s2629_s29 + $0x20] sm:$0xff] %v1362_v11 }
 0x25b   : > { %1367 = vst [vmem:[%s2629_s29 + $0x28] sm:$0xff] %v1363_v12 }
 0x25c   : > { %v1335_v17 = vpop.f32.mrf.mxu2  ;;  %v1355_v18 = vpop.f32.mrf.mxu3 }
 0x25d   : > { %v1360_v19 = vadd.f32 %v1335_v17, %v1276_v15  ;;  %v1361_v20 = vadd.f32 %v1355_v18, %v1277_v16 }
 0x25f   : > { %v1364_v21 = vadd.f32 %v1360_v19, %v2625_v36  ;;  %v1365_v22 = vadd.f32 %v1361_v20, %v2625_v36 }
 0x261   : > { %1368 = vst [vmem:[%s2629_s29 + $0x30] sm:$0xff] %v1364_v21 }
 0x262   : > { %1369 = vst [vmem:[%s2629_s29 + $0x38] sm:$0xff] %v1365_v22 }
 0x263   : > { %1682 = shalt.err (!%p1679_p9)
}
 0x264   : > { %1517 = dma.vmem_to_hbm [thread:$0]  (%p1808_p4), %s1387_s18, 1024, %s1389_s8, %s1371_s9  }
 0x265 PF: > { %p1529_p10 = scmp.ge.s32.totalorder %s1737_s20, 2  ;;  %s1400_s24 = sand.u32 1, %s1717_s15  }
 0x266   : > { %s1401_s26 = scalar_lea.sflag [#allocation4], %s1400_s24 }
 0x267   : > { %p1524_p11 = pnand %p1529_p10, %p1815_p8 }
 0x269   : > { %p1525_p12 = pneg %p1524_p11 }
 0x26b   : > { %1712 = dma.done.wait (%p1525_p12), %s1401_s26, 1024  }
 0x26c   : > { %1714 = vsyncadd (%p1525_p12), %s1401_s26, 4294966272  ;;  %s18_s20 = sadd.s32 1, %s1737_s20   ;;  %s3314_s15 = smov %s1721_s16 }
 0x26d   : > { %p15_p13 = scmp.ge.s32.totalorder %s18_s20, 4   ;;  %s3315_s16 = smov %s1725_s17 }
 0x26e   : > { %s3316_s17 = smov %s1821_s28  ;;  %s3317_s18 = smov %s1733_s19 }
 0x26f   : > { %s3318_s19 = smov %s3320_s23  ;;  %17 = sbr.rel (!%p15_p13) target bundleno = 5 (0x5), region = 82 }
 0x274   :  { %1407 = vsyncpa [#allocation3], 1 }
 0x275   :  { %1409 = vsyncpa [#allocation3 + $0x1], 1 }
 0x276   :  { %1410 = vsyncpa [#allocation4], 1 }
 0x277   :  { %1412 = vsyncpa [#allocation4 + $0x1], 1 }

</bundles_post_ra>
